<compile_context>
chip_gen: v7x
topology: tpu7x:2x2x1
jax: 0.10.0
libtpu: 0.0.40
codegen_flags: <defaults>
</compile_context>

<pallas_src>
import jax
import jax.numpy as jnp
from jax.experimental import pallas as pl
from jax.experimental.pallas import tpu as pltpu

HIDDEN = 1024  # fc3 output width / fc1 input width (fixed by the module)


def _leaky_relu(x, slope=0.2):
    return jnp.where(x > 0, x, slope * x)


def generator_kernel(h_ref, w3_ref, b3_ref, w1_ref, b1_ref, w2_ref, b2_ref, o_ref):
    # fc3: (nz + attSize) -> 1024, LeakyReLU(0.2).  Single dot on the fused
    # concat activation (one MXU pass; no extra (tile_b, 1024) VPU add).
    x = (jnp.dot(h_ref[...], w3_ref[...], preferred_element_type=jnp.float32)
         + b3_ref[...])
    x = _leaky_relu(x).astype(jnp.bfloat16)      # keep intermediates bf16

    # fc1: 1024 -> ngh, LeakyReLU(0.2)
    x = jnp.dot(x, w1_ref[...], preferred_element_type=jnp.float32) + b1_ref[...]
    x = _leaky_relu(x).astype(jnp.bfloat16)

    # fc2: ngh -> resSize, ReLU
    x = jnp.dot(x, w2_ref[...], preferred_element_type=jnp.float32) + b2_ref[...]
    o_ref[...] = jnp.maximum(x, 0.0).astype(o_ref.dtype)


def _round_up(x, m):
    return ((x + m - 1) // m) * m


def _vmem_capacity_bytes():
    try:
        return int(pltpu.get_tpu_info().vmem_capacity_bytes)
    except Exception:
        return 64 << 20  # conservative: v7x per-core VMEM


def _pick_tile_b(batch, tile_cap):
    """Batch tile: >=2 grid steps when possible (v7x megacore), multiples of
    8 (sublane), snapped to multiples of 128 for large batches (MXU M rows)."""
    if batch <= 8:
        return batch                                   # can't split below 8 sublanes
    tile = min(_round_up(pl.cdiv(batch, 2), 8), tile_cap)
    if tile >= 128:
        tile = (tile // 128) * 128
    return tile


def _vmem_need_bytes(tile_b, in_feat, ngh, res_size, weight_bytes, out_itemsize):
    act_in = 2 * tile_b * in_feat * 2                  # double-buffered bf16 input tiles
    act_out = 2 * tile_b * res_size * out_itemsize     # double-buffered output tiles
    live = tile_b * (HIDDEN + ngh + res_size) * 4      # f32 intermediates headroom
    return weight_bytes + act_in + act_out + live + (4 << 20)  # weights single-buffered


def generator_forward(noise, att, params, *, tile_b=None, out_dtype=jnp.float32):
    """params: w3 (nz+attSize, 1024), b3 (1, 1024),
               w1 (1024, ngh),        b1 (1, ngh),
               w2 (ngh, resSize),     b2 (1, resSize).
    Weights are stored (in, out) (transpose of PyTorch).  Set
    out_dtype=jnp.bfloat16 to halve the output writeback if the consumer
    tolerates it."""
    B, nz = noise.shape
    _, att_size = att.shape
    in_feat = nz + att_size
    assert params["w3"].shape == (in_feat, HIDDEN)
    ngh = params["w1"].shape[1]
    res_size = params["w2"].shape[1]

    cap = _vmem_capacity_bytes()
    out_itemsize = jnp.dtype(out_dtype).itemsize
    weight_bytes = sum(int(v.size) * v.dtype.itemsize for v in params.values())

    if tile_b is None:
        tile_cap = 512 if cap >= (100 << 20) else 256   # 128-MiB v5e/v6e vs 64-MiB v7x
        tile_b = _pick_tile_b(B, tile_cap)

    # Never silently clamp the VMEM budget below the real requirement: shrink
    # the batch tile until the footprint fits ~90% of physical VMEM.
    budget = int(cap * 0.9)
    while (tile_b > 8 and
           _vmem_need_bytes(tile_b, in_feat, ngh, res_size, weight_bytes,
                            out_itemsize) > budget):
        tile_b = max(8, _round_up(tile_b // 2, 8))
    need = _vmem_need_bytes(tile_b, in_feat, ngh, res_size, weight_bytes, out_itemsize)
    if need > budget:
        # Weights alone don't fit VMEM; the fully-fused kernel would spill.
        # TODO(synk): add an ngh-tiled fallback (grid axis over ngh chunks with a
        # VMEM fc2 accumulator) for very large ngh/resSize on 64-MiB v7x VMEM.
        raise ValueError(
            f"Generator weights ({weight_bytes >> 20} MiB) exceed the "
            f"{cap >> 20} MiB VMEM budget; an ngh-tiled kernel is required.")
    vmem_limit = int(min(max(int(need * 1.25), 16 << 20), cap))

    # Fused bf16 activation; ~B*(nz+attSize)*2 bytes, negligible vs weight streaming.
    h16 = jnp.concatenate([noise, att], axis=1).astype(jnp.bfloat16)

    # NOTE: when B % tile_b != 0 the tail block reads padded (undefined) rows.
    # Safe here: every matmul contracts only along K, so padded rows cannot
    # contaminate valid rows, and their stores fall outside the output array.
    # Do not add row-wise (batch-axis) reductions without revisiting this.
    flops = 2 * B * (in_feat * HIDDEN + HIDDEN * ngh + ngh * res_size)
    bytes_accessed = (weight_bytes                      # weights + biases, streamed once
                      + B * in_feat * 2                 # bf16 fused input
                      + B * res_size * out_itemsize)    # output writeback
    cost = pl.CostEstimate(flops=flops, transcendentals=0,
                           bytes_accessed=bytes_accessed)

    def _call(single_buffer_weights):
        wkw = {"pipeline_mode": pl.Buffered(1)} if single_buffer_weights else {}

        def resident(shape):
            # Block index never changes across the grid -> weights stay VMEM
            # resident; Buffered(1) avoids allocating a useless second buffer.
            return pl.BlockSpec(shape, lambda i: (0, 0), **wkw)

        return pl.pallas_call(
            generator_kernel,
            out_shape=jax.ShapeDtypeStruct((B, res_size), out_dtype),
            grid=(pl.cdiv(B, tile_b),),
            in_specs=[
                pl.BlockSpec((tile_b, in_feat), lambda i: (i, 0)),
                resident(params["w3"].shape), resident(params["b3"].shape),
                resident(params["w1"].shape), resident(params["b1"].shape),
                resident(params["w2"].shape), resident(params["b2"].shape),
            ],
            out_specs=pl.BlockSpec((tile_b, res_size), lambda i: (i, 0)),
            compiler_params=pltpu.CompilerParams(
                dimension_semantics=("parallel",),
                vmem_limit_bytes=vmem_limit),
            cost_estimate=cost,
        )(h16, params["w3"], params["b3"], params["w1"], params["b1"],
          params["w2"], params["b2"])

    try:
        return _call(single_buffer_weights=True)
    except Exception:
        # Fallback if this jax version rejects pl.Buffered(1): default
        # double-buffering (costs one extra weight footprint in VMEM).
        return _call(single_buffer_weights=False)


def init_params(key, att_size, nz, ngh, res_size, wdtype=jnp.bfloat16):
    """Mirror weights_init: Linear weights ~ N(0, 0.02), biases = 0.
    Weights stored (in, out); cat order is (noise, att) as in the module."""
    k3, k1, k2 = jax.random.split(key, 3)
    return {
        "w3": (0.02 * jax.random.normal(k3, (nz + att_size, HIDDEN), jnp.float32)
               ).astype(wdtype),
        "b3": jnp.zeros((1, HIDDEN), jnp.float32),
        "w1": (0.02 * jax.random.normal(k1, (HIDDEN, ngh), jnp.float32)).astype(wdtype),
        "b1": jnp.zeros((1, ngh), jnp.float32),
        "w2": (0.02 * jax.random.normal(k2, (ngh, res_size), jnp.float32)).astype(wdtype),
        "b2": jnp.zeros((1, res_size), jnp.float32),
    }


def reference_forward(noise, att, params):
    """Pure-JAX f32 reference using the same (possibly bf16-quantized) weights."""
    h = jnp.concatenate([noise, att], axis=1)
    x = h @ params["w3"].astype(jnp.float32) + params["b3"]
    x = jnp.where(x > 0, x, 0.2 * x)
    x = x @ params["w1"].astype(jnp.float32) + params["b1"]
    x = jnp.where(x > 0, x, 0.2 * x)
    x = x @ params["w2"].astype(jnp.float32) + params["b2"]
    return jnp.maximum(x, 0.0)


if __name__ == "__main__":
    # Small, forward-consistent sizes (fc3 output / fc1 input fixed at 1024).
    # B=16 exercises the multi-step batch grid (tile_b=8, 2 "parallel" steps).
    # RES_SIZE is a multiple of 128 so output stores are lane-dense (unmasked vst).
    B, ATT_SIZE, NZ, NGH, RES_SIZE = 16, 32, 32, 128, 256

    key = jax.random.PRNGKey(0)
    kp, kn, ka = jax.random.split(key, 3)

    params = init_params(kp, ATT_SIZE, NZ, NGH, RES_SIZE)
    noise = jax.random.normal(kn, (B, NZ), jnp.float32)
    att = jax.random.normal(ka, (B, ATT_SIZE), jnp.float32)

    out = jax.block_until_ready(generator_forward(noise, att, params))
    ref = reference_forward(noise, att, params)

    assert out.shape == (B, RES_SIZE)
    err = float(jnp.max(jnp.abs(out - ref)))
    scale = float(jnp.max(jnp.abs(ref))) + 1e-6
    assert err <= 5e-2 * scale + 1e-5, f"mismatch vs reference (err={err}, scale={scale})"

    print("KERNEL_OK")
</pallas_src>

<mosaic_0001>
module attributes {stable_mosaic.version = 11 : i64} {
  func.func @generator_kernel(%arg0: i32, %arg1: memref<8x64xbf16, #tpu.memory_space<vmem>>, %arg2: memref<64x1024xbf16, #tpu.memory_space<vmem>>, %arg3: memref<1x1024xf32, #tpu.memory_space<vmem>>, %arg4: memref<1024x128xbf16, #tpu.memory_space<vmem>>, %arg5: memref<1x128xf32, #tpu.memory_space<vmem>>, %arg6: memref<128x256xbf16, #tpu.memory_space<vmem>>, %arg7: memref<1x256xf32, #tpu.memory_space<vmem>>, %arg8: memref<8x256xf32, #tpu.memory_space<vmem>>) attributes {dimension_semantics = [#tpu.dimension_semantics<parallel>], iteration_bounds = array<i64: 2>, scalar_prefetch = 0 : i64, scratch_operands = 0 : i64, tpu.core_type = #tpu.core_type<tc>, window_params = [{transform_indices = @transform_0, window_bounds = array<i64: 8, 64>}, {pipeline_mode = #tpu.pipeline_mode<synchronous>, transform_indices = @transform_1, window_bounds = array<i64: 64, 1024>}, {pipeline_mode = #tpu.pipeline_mode<synchronous>, transform_indices = @transform_2, window_bounds = array<i64: 1, 1024>}, {pipeline_mode = #tpu.pipeline_mode<synchronous>, transform_indices = @transform_3, window_bounds = array<i64: 1024, 128>}, {pipeline_mode = #tpu.pipeline_mode<synchronous>, transform_indices = @transform_4, window_bounds = array<i64: 1, 128>}, {pipeline_mode = #tpu.pipeline_mode<synchronous>, transform_indices = @transform_5, window_bounds = array<i64: 128, 256>}, {pipeline_mode = #tpu.pipeline_mode<synchronous>, transform_indices = @transform_6, window_bounds = array<i64: 1, 256>}, {transform_indices = @transform_7, window_bounds = array<i64: 8, 256>}]} {
    %c0 = arith.constant 0 : index
    %c0_0 = arith.constant 0 : index
    %0 = vector.load %arg1[%c0, %c0_0] : memref<8x64xbf16, #tpu.memory_space<vmem>>, vector<8x64xbf16>
    %c0_1 = arith.constant 0 : index
    %c0_2 = arith.constant 0 : index
    %1 = vector.load %arg2[%c0_1, %c0_2] : memref<64x1024xbf16, #tpu.memory_space<vmem>>, vector<64x1024xbf16>
    %cst = arith.constant dense<0.000000e+00> : vector<8x1024xf32>
    %2 = tpu.matmul %0, %1, %cst {dimension_numbers = #tpu.dot_dimension_numbers<[1], [0], [0], [1], [0, 0, 1, 1], [], []>} : vector<8x64xbf16>, vector<64x1024xbf16>, vector<8x1024xf32> -> vector<8x1024xf32>
    %c0_3 = arith.constant 0 : index
    %c0_4 = arith.constant 0 : index
    %3 = vector.load %arg3[%c0_3, %c0_4] : memref<1x1024xf32, #tpu.memory_space<vmem>>, vector<1x1024xf32>
    %4 = vector.broadcast %3 : vector<1x1024xf32> to vector<8x1024xf32>
    %5 = arith.addf %2, %4 : vector<8x1024xf32>
    %cst_5 = arith.constant 0.000000e+00 : f32
    %6 = vector.broadcast %cst_5 : f32 to vector<8x1024xf32>
    %7 = arith.cmpf ogt, %5, %6 : vector<8x1024xf32>
    %cst_6 = arith.constant 2.000000e-01 : f32
    %8 = vector.broadcast %cst_6 : f32 to vector<8x1024xf32>
    %9 = arith.mulf %8, %5 : vector<8x1024xf32>
    %10 = arith.select %7, %5, %9 : vector<8x1024xi1>, vector<8x1024xf32>
    %11 = arith.truncf %10 : vector<8x1024xf32> to vector<8x1024xbf16>
    %c0_7 = arith.constant 0 : index
    %c0_8 = arith.constant 0 : index
    %12 = vector.load %arg4[%c0_7, %c0_8] : memref<1024x128xbf16, #tpu.memory_space<vmem>>, vector<1024x128xbf16>
    %cst_9 = arith.constant dense<0.000000e+00> : vector<8x128xf32>
    %13 = tpu.matmul %11, %12, %cst_9 {dimension_numbers = #tpu.dot_dimension_numbers<[1], [0], [0], [1], [0, 0, 1, 1], [], []>} : vector<8x1024xbf16>, vector<1024x128xbf16>, vector<8x128xf32> -> vector<8x128xf32>
    %c0_10 = arith.constant 0 : index
    %c0_11 = arith.constant 0 : index
    %14 = vector.load %arg5[%c0_10, %c0_11] : memref<1x128xf32, #tpu.memory_space<vmem>>, vector<1x128xf32>
    %15 = vector.broadcast %14 : vector<1x128xf32> to vector<8x128xf32>
    %16 = arith.addf %13, %15 : vector<8x128xf32>
    %cst_12 = arith.constant 0.000000e+00 : f32
    %17 = vector.broadcast %cst_12 : f32 to vector<8x128xf32>
    %18 = arith.cmpf ogt, %16, %17 : vector<8x128xf32>
    %cst_13 = arith.constant 2.000000e-01 : f32
    %19 = vector.broadcast %cst_13 : f32 to vector<8x128xf32>
    %20 = arith.mulf %19, %16 : vector<8x128xf32>
    %21 = arith.select %18, %16, %20 : vector<8x128xi1>, vector<8x128xf32>
    %22 = arith.truncf %21 : vector<8x128xf32> to vector<8x128xbf16>
    %c0_14 = arith.constant 0 : index
    %c0_15 = arith.constant 0 : index
    %23 = vector.load %arg6[%c0_14, %c0_15] : memref<128x256xbf16, #tpu.memory_space<vmem>>, vector<128x256xbf16>
    %cst_16 = arith.constant dense<0.000000e+00> : vector<8x256xf32>
    %24 = tpu.matmul %22, %23, %cst_16 {dimension_numbers = #tpu.dot_dimension_numbers<[1], [0], [0], [1], [0, 0, 1, 1], [], []>} : vector<8x128xbf16>, vector<128x256xbf16>, vector<8x256xf32> -> vector<8x256xf32>
    %c0_17 = arith.constant 0 : index
    %c0_18 = arith.constant 0 : index
    %25 = vector.load %arg7[%c0_17, %c0_18] : memref<1x256xf32, #tpu.memory_space<vmem>>, vector<1x256xf32>
    %26 = vector.broadcast %25 : vector<1x256xf32> to vector<8x256xf32>
    %27 = arith.addf %24, %26 : vector<8x256xf32>
    %cst_19 = arith.constant 0.000000e+00 : f32
    %28 = vector.broadcast %cst_19 : f32 to vector<8x256xf32>
    %29 = arith.maximumf %27, %28 : vector<8x256xf32>
    %c0_20 = arith.constant 0 : index
    %c0_21 = arith.constant 0 : index
    %30 = vector.load %arg8[%c0_20, %c0_21] : memref<8x256xf32, #tpu.memory_space<vmem>>, vector<8x256xf32>
    tpu.vector_store %arg8[%c0_20, %c0_21], %29 {strides = array<i32>} : memref<8x256xf32, #tpu.memory_space<vmem>>, vector<8x256xf32>,
    return
  }
  func.func @transform_0(%arg0: i32) -> (i32, i32) {
    %c0_i32 = arith.constant 0 : i32
    %c0_i32_0 = arith.constant 0 : i32
    return %arg0, %c0_i32 : i32, i32
  }
  func.func @transform_1(%arg0: i32) -> (i32, i32) {
    %c0_i32 = arith.constant 0 : i32
    %c0_i32_0 = arith.constant 0 : i32
    %c0_i32_1 = arith.constant 0 : i32
    return %c0_i32, %c0_i32_0 : i32, i32
  }
  func.func @transform_2(%arg0: i32) -> (i32, i32) {
    %c0_i32 = arith.constant 0 : i32
    %c0_i32_0 = arith.constant 0 : i32
    %c0_i32_1 = arith.constant 0 : i32
    return %c0_i32, %c0_i32_0 : i32, i32
  }
  func.func @transform_3(%arg0: i32) -> (i32, i32) {
    %c0_i32 = arith.constant 0 : i32
    %c0_i32_0 = arith.constant 0 : i32
    %c0_i32_1 = arith.constant 0 : i32
    return %c0_i32, %c0_i32_0 : i32, i32
  }
  func.func @transform_4(%arg0: i32) -> (i32, i32) {
    %c0_i32 = arith.constant 0 : i32
    %c0_i32_0 = arith.constant 0 : i32
    %c0_i32_1 = arith.constant 0 : i32
    return %c0_i32, %c0_i32_0 : i32, i32
  }
  func.func @transform_5(%arg0: i32) -> (i32, i32) {
    %c0_i32 = arith.constant 0 : i32
    %c0_i32_0 = arith.constant 0 : i32
    %c0_i32_1 = arith.constant 0 : i32
    return %c0_i32, %c0_i32_0 : i32, i32
  }
  func.func @transform_6(%arg0: i32) -> (i32, i32) {
    %c0_i32 = arith.constant 0 : i32
    %c0_i32_0 = arith.constant 0 : i32
    %c0_i32_1 = arith.constant 0 : i32
    return %c0_i32, %c0_i32_0 : i32, i32
  }
  func.func @transform_7(%arg0: i32) -> (i32, i32) {
    %c0_i32 = arith.constant 0 : i32
    %c0_i32_0 = arith.constant 0 : i32
    return %arg0, %c0_i32 : i32, i32
  }
}

module attributes {stable_mosaic.version = 11 : i64} {
  func.func @generator_kernel(%arg0: i32, %arg1: memref<8x64xbf16, #tpu.memory_space<vmem>>, %arg2: memref<64x1024xbf16, #tpu.memory_space<vmem>>, %arg3: memref<1x1024xf32, #tpu.memory_space<vmem>>, %arg4: memref<1024x128xbf16, #tpu.memory_space<vmem>>, %arg5: memref<1x128xf32, #tpu.memory_space<vmem>>, %arg6: memref<128x256xbf16, #tpu.memory_space<vmem>>, %arg7: memref<1x256xf32, #tpu.memory_space<vmem>>, %arg8: memref<8x256xf32, #tpu.memory_space<vmem>>) attributes {dimension_semantics = [#tpu.dimension_semantics<parallel>], iteration_bounds = array<i64: 2>, scalar_prefetch = 0 : i64, scratch_operands = 0 : i64, tpu.core_type = #tpu.core_type<tc>, window_params = [{transform_indices = @transform_0, window_bounds = array<i64: 8, 64>}, {pipeline_mode = #tpu.pipeline_mode<synchronous>, transform_indices = @transform_1, window_bounds = array<i64: 64, 1024>}, {pipeline_mode = #tpu.pipeline_mode<synchronous>, transform_indices = @transform_2, window_bounds = array<i64: 1, 1024>}, {pipeline_mode = #tpu.pipeline_mode<synchronous>, transform_indices = @transform_3, window_bounds = array<i64: 1024, 128>}, {pipeline_mode = #tpu.pipeline_mode<synchronous>, transform_indices = @transform_4, window_bounds = array<i64: 1, 128>}, {pipeline_mode = #tpu.pipeline_mode<synchronous>, transform_indices = @transform_5, window_bounds = array<i64: 128, 256>}, {pipeline_mode = #tpu.pipeline_mode<synchronous>, transform_indices = @transform_6, window_bounds = array<i64: 1, 256>}, {transform_indices = @transform_7, window_bounds = array<i64: 8, 256>}]} {
    %c0 = arith.constant 0 : index
    %c0_0 = arith.constant 0 : index
    %0 = vector.load %arg1[%c0, %c0_0] : memref<8x64xbf16, #tpu.memory_space<vmem>>, vector<8x64xbf16>
    %c0_1 = arith.constant 0 : index
    %c0_2 = arith.constant 0 : index
    %1 = vector.load %arg2[%c0_1, %c0_2] : memref<64x1024xbf16, #tpu.memory_space<vmem>>, vector<64x1024xbf16>
    %cst = arith.constant dense<0.000000e+00> : vector<8x1024xf32>
    %2 = tpu.matmul %0, %1, %cst {dimension_numbers = #tpu.dot_dimension_numbers<[1], [0], [0], [1], [0, 0, 1, 1], [], []>} : vector<8x64xbf16>, vector<64x1024xbf16>, vector<8x1024xf32> -> vector<8x1024xf32>
    %c0_3 = arith.constant 0 : index
    %c0_4 = arith.constant 0 : index
    %3 = vector.load %arg3[%c0_3, %c0_4] : memref<1x1024xf32, #tpu.memory_space<vmem>>, vector<1x1024xf32>
    %4 = vector.broadcast %3 : vector<1x1024xf32> to vector<8x1024xf32>
    %5 = arith.addf %2, %4 : vector<8x1024xf32>
    %cst_5 = arith.constant 0.000000e+00 : f32
    %6 = vector.broadcast %cst_5 : f32 to vector<8x1024xf32>
    %7 = arith.cmpf ogt, %5, %6 : vector<8x1024xf32>
    %cst_6 = arith.constant 2.000000e-01 : f32
    %8 = vector.broadcast %cst_6 : f32 to vector<8x1024xf32>
    %9 = arith.mulf %8, %5 : vector<8x1024xf32>
    %10 = arith.select %7, %5, %9 : vector<8x1024xi1>, vector<8x1024xf32>
    %11 = arith.truncf %10 : vector<8x1024xf32> to vector<8x1024xbf16>
    %c0_7 = arith.constant 0 : index
    %c0_8 = arith.constant 0 : index
    %12 = vector.load %arg4[%c0_7, %c0_8] : memref<1024x128xbf16, #tpu.memory_space<vmem>>, vector<1024x128xbf16>
    %cst_9 = arith.constant dense<0.000000e+00> : vector<8x128xf32>
    %13 = tpu.matmul %11, %12, %cst_9 {dimension_numbers = #tpu.dot_dimension_numbers<[1], [0], [0], [1], [0, 0, 1, 1], [], []>} : vector<8x1024xbf16>, vector<1024x128xbf16>, vector<8x128xf32> -> vector<8x128xf32>
    %c0_10 = arith.constant 0 : index
    %c0_11 = arith.constant 0 : index
    %14 = vector.load %arg5[%c0_10, %c0_11] : memref<1x128xf32, #tpu.memory_space<vmem>>, vector<1x128xf32>
    %15 = vector.broadcast %14 : vector<1x128xf32> to vector<8x128xf32>
    %16 = arith.addf %13, %15 : vector<8x128xf32>
    %cst_12 = arith.constant 0.000000e+00 : f32
    %17 = vector.broadcast %cst_12 : f32 to vector<8x128xf32>
    %18 = arith.cmpf ogt, %16, %17 : vector<8x128xf32>
    %cst_13 = arith.constant 2.000000e-01 : f32
    %19 = vector.broadcast %cst_13 : f32 to vector<8x128xf32>
    %20 = arith.mulf %19, %16 : vector<8x128xf32>
    %21 = arith.select %18, %16, %20 : vector<8x128xi1>, vector<8x128xf32>
    %22 = arith.truncf %21 : vector<8x128xf32> to vector<8x128xbf16>
    %c0_14 = arith.constant 0 : index
    %c0_15 = arith.constant 0 : index
    %23 = vector.load %arg6[%c0_14, %c0_15] : memref<128x256xbf16, #tpu.memory_space<vmem>>, vector<128x256xbf16>
    %cst_16 = arith.constant dense<0.000000e+00> : vector<8x256xf32>
    %24 = tpu.matmul %22, %23, %cst_16 {dimension_numbers = #tpu.dot_dimension_numbers<[1], [0], [0], [1], [0, 0, 1, 1], [], []>} : vector<8x128xbf16>, vector<128x256xbf16>, vector<8x256xf32> -> vector<8x256xf32>
    %c0_17 = arith.constant 0 : index
    %c0_18 = arith.constant 0 : index
    %25 = vector.load %arg7[%c0_17, %c0_18] : memref<1x256xf32, #tpu.memory_space<vmem>>, vector<1x256xf32>
    %26 = vector.broadcast %25 : vector<1x256xf32> to vector<8x256xf32>
    %27 = arith.addf %24, %26 : vector<8x256xf32>
    %cst_19 = arith.constant 0.000000e+00 : f32
    %28 = vector.broadcast %cst_19 : f32 to vector<8x256xf32>
    %29 = arith.maximumf %27, %28 : vector<8x256xf32>
    %c0_20 = arith.constant 0 : index
    %c0_21 = arith.constant 0 : index
    %30 = vector.load %arg8[%c0_20, %c0_21] : memref<8x256xf32, #tpu.memory_space<vmem>>, vector<8x256xf32>
    tpu.vector_store %arg8[%c0_20, %c0_21], %29 {strides = array<i32>} : memref<8x256xf32, #tpu.memory_space<vmem>>, vector<8x256xf32>,
    return
  }
  func.func @transform_0(%arg0: i32) -> (i32, i32) {
    %c0_i32 = arith.constant 0 : i32
    %c0_i32_0 = arith.constant 0 : i32
    return %arg0, %c0_i32 : i32, i32
  }
  func.func @transform_1(%arg0: i32) -> (i32, i32) {
    %c0_i32 = arith.constant 0 : i32
    %c0_i32_0 = arith.constant 0 : i32
    %c0_i32_1 = arith.constant 0 : i32
    return %c0_i32, %c0_i32_0 : i32, i32
  }
  func.func @transform_2(%arg0: i32) -> (i32, i32) {
    %c0_i32 = arith.constant 0 : i32
    %c0_i32_0 = arith.constant 0 : i32
    %c0_i32_1 = arith.constant 0 : i32
    return %c0_i32, %c0_i32_0 : i32, i32
  }
  func.func @transform_3(%arg0: i32) -> (i32, i32) {
    %c0_i32 = arith.constant 0 : i32
    %c0_i32_0 = arith.constant 0 : i32
    %c0_i32_1 = arith.constant 0 : i32
    return %c0_i32, %c0_i32_0 : i32, i32
  }
  func.func @transform_4(%arg0: i32) -> (i32, i32) {
    %c0_i32 = arith.constant 0 : i32
    %c0_i32_0 = arith.constant 0 : i32
    %c0_i32_1 = arith.constant 0 : i32
    return %c0_i32, %c0_i32_0 : i32, i32
  }
  func.func @transform_5(%arg0: i32) -> (i32, i32) {
    %c0_i32 = arith.constant 0 : i32
    %c0_i32_0 = arith.constant 0 : i32
    %c0_i32_1 = arith.constant 0 : i32
    return %c0_i32, %c0_i32_0 : i32, i32
  }
  func.func @transform_6(%arg0: i32) -> (i32, i32) {
    %c0_i32 = arith.constant 0 : i32
    %c0_i32_0 = arith.constant 0 : i32
    %c0_i32_1 = arith.constant 0 : i32
    return %c0_i32, %c0_i32_0 : i32, i32
  }
  func.func @transform_7(%arg0: i32) -> (i32, i32) {
    %c0_i32 = arith.constant 0 : i32
    %c0_i32_0 = arith.constant 0 : i32
    return %arg0, %c0_i32 : i32, i32
  }
}

</mosaic_0001>

<bundles_post_ra>
// kernel: tpu_custom_call.1
= control target key start
LH: loop header
LB: loop body
LE: loop exit
PB: predicated region body
PF: predicated region fallthrough
CT: control target
= control target key end

     0   :  { %12 = vsyncpa [#allocation3], 0  ;;  %s2754_s0 = inlined_call_operand.hbm [shape: bf16[16,64], index: 0, kind: input, shape index: {}]   ;;  %s2755_s1 = inlined_call_operand.hbm [shape: bf16[64,1024], index: 1, kind: input, shape index: {}]   ;;  %s2756_s2 = inlined_call_operand.hbm [shape: f32[1,1024], index: 2, kind: input, shape index: {}]   ;;  %s2757_s3 = inlined_call_operand.hbm [shape: bf16[1024,128], index: 3, kind: input, shape index: {}]   ;;  %s2758_s4 = inlined_call_operand.vmem [shape: f32[1,128], index: 4, kind: input, shape index: {}]   ;;  %s2759_s5 = inlined_call_operand.hbm [shape: bf16[128,256], index: 5, kind: input, shape index: {}]   ;;  %s2760_s6 = inlined_call_operand.vmem [shape: f32[1,256], index: 6, kind: input, shape index: {}]   ;;  %s2761_s7 = inlined_call_operand.hbm [shape: f32[16,256], index: 7, kind: output, shape index: {}]  }
   0x1   :  { %14 = vsyncpa [#allocation3 + $0x1], 0 }
   0x2   :  { %15 = vsyncpa [#allocation6], 0 }
   0x3   :  { %16 = vsyncpa [#allocation9], 0 }
   0x4   :  { %17 = vsyncpa [#allocation4], 0 }
   0x5   :  { %19 = vsyncpa [#allocation4 + $0x1], 0  ;;  %s2425_s24 = smov 0   ;;  %s2427_s25 = smov 0  }
   0x6   :  { %s2429_s26 = smov 0   ;;  %s2431_s27 = smov 0  }
   0x7 LB: > { %s2372_s28 = smov [#allocation5]   ;;  %s2446_s30 = sadd.s32 4294967295, %s2370_s27   ;;  %s2370_s27 = sphi %s2431_s27, %s2785_s27   ;;  %s2366_s26 = sphi %s2429_s26, %s2784_s26   ;;  %s2362_s25 = sphi %s2427_s25, %s2783_s25   ;;  %s2358_s24 = sphi %s2425_s24, %s2782_s24  }
   0x8   : > { %s220_s29 = sshll.u32 %s2372_s28, 4  ;;  %p1746_p0 = scmp.ge.s32.totalorder %s2370_s27, 1  ;;  %s2451_s29 = int_to_ptr.vmem [resolvable:$true] %s220_s29 }
   0x9   : > { %p2762_p1 = scmp.eq.s32.totalorder %s2446_s30, 0  ;;  %p208_p2 = scmp.lt.s32.totalorder %s2370_s27, 3 }
   0xa   : > { %s2373_s9 = smov [#allocation8]   ;;  %s2374_s12 = smov [#allocation7]  }
   0xb   : > { %p2453_p3 = pnand %p1746_p0, %p208_p2  ;;  %s244_s10 = sshll.u32 %s2373_s9, 4  ;;  %s2466_s10 = int_to_ptr.vmem [resolvable:$true] %s244_s10 }
   0xc   : > { %s2468_s13 = sshll.u32 %s2374_s12, 4  ;;  %s2154_s16 = scalar_lea.hbm %s2755_s1, 4096  ;;  %s235_s13 = int_to_ptr.vmem [resolvable:$true] %s2468_s13 }
   0xd   : > { %s2765_s8 = scalar_select %p2453_p3, 1, 0 }
   0xe   : > { %p1992_p5 = pneg %p2453_p3  ;;  %p2155_p7 = scmp.ne.s32.totalorder %s2755_s1, %s2154_s16 }
   0xf   : > { %p2161_p11 = scmp.lt.u32.totalorder %s2154_s16, %s2755_s1 }
  0x10   : > { %p2462_p6 = pnand %p1992_p5, %p2762_p1 }
  0x12   : > { %p2478_p8 = pneg %p2462_p6 }
  0x14   : > { %p2157_p9 = pnand %p2478_p8, %p2155_p7 }
  0x16   : > { %p2158_p10 = pneg %p2157_p9 }
  0x18   : > { %p2163_p12 = pnand %p2161_p11, %p2158_p10 }
  0x1a   : > { %2166 = shalt.err (!%p2163_p12)
}
  0x1b   : > { %s2167_s22 = scalar_lea.vmem %s2451_s29, 4096  ;;  %p2175_p5 = scmp.lt.s32.totalorder %s2451_s29, %s2451_s29 }
  0x1c   : > { %p2168_p13 = scmp.ne.s32.totalorder %s2451_s29, %s2167_s22  ;;  %p2176_p4 = scmp.lt.s32.totalorder %s2167_s22, %s2167_s22 }
  0x1e   : > { %p2170_p0 = pnand %p2168_p13, %p2478_p8  ;;  %p2177_p7 = por %p2176_p4, %p2175_p5 }
  0x20   : > { %p2171_p2 = pneg %p2170_p0 }
  0x22   : > { %p2178_p9 = pnand %p2177_p7, %p2171_p2 }
  0x24   : > { %2181 = shalt.err (!%p2178_p9)
}
  0x25   : > { %s2375_s23 = smov 512   ;;  %s2376_s28 = smov 32  }
  0x26   : > { %1995 = dma.hbm_to_vmem [thread:$0]  (!%p2462_p6), %s2755_s1, 4096, %s2451_s29, [#allocation6], %s2375_s23, %s2375_s23, %s2376_s28  }
  0x27   : > { %s2182_s16 = scalar_lea.hbm %s2757_s3, 8192 }
  0x28   : > { %p2183_p4 = scmp.ne.s32.totalorder %s2757_s3, %s2182_s16  ;;  %p2189_p12 = scmp.lt.u32.totalorder %s2182_s16, %s2757_s3 }
  0x2a   : > { %p2185_p10 = pnand %p2183_p4, %p2478_p8 }
  0x2c   : > { %p2186_p11 = pneg %p2185_p10 }
  0x2e   : > { %p2191_p13 = pnand %p2189_p12, %p2186_p11 }
  0x30   : > { %2194 = shalt.err (!%p2191_p13)
}
  0x31   : > { %s2195_s29 = scalar_lea.vmem %s2466_s10, 8192  ;;  %p2203_p7 = scmp.lt.s32.totalorder %s2466_s10, %s2466_s10 }
  0x32   : > { %p2196_p0 = scmp.ne.s32.totalorder %s2466_s10, %s2195_s29  ;;  %p2204_p9 = scmp.lt.s32.totalorder %s2195_s29, %s2195_s29 }
  0x34   : > { %p2198_p2 = pnand %p2196_p0, %p2478_p8  ;;  %p2205_p4 = por %p2204_p9, %p2203_p7 }
  0x36   : > { %p2199_p5 = pneg %p2198_p2 }
  0x38   : > { %p2206_p10 = pnand %p2205_p4, %p2199_p5 }
  0x3a   : > { %2209 = shalt.err (!%p2206_p10)
}
  0x3b   : > { %s2377_s22 = smov 64   ;;  %s2378_s23 = smov 4  }
  0x3c   : > { %2001 = dma.hbm_to_vmem [thread:$0]  (!%p2462_p6), %s2757_s3, 8192, %s2466_s10, [#allocation9], %s2377_s22, %s2377_s22, %s2378_s23  }
  0x3d   : > { %s2210_s15 = scalar_lea.hbm %s2756_s2, 128 }
  0x3e   : > { %p2211_p11 = scmp.ne.s32.totalorder %s2756_s2, %s2210_s15  ;;  %p2217_p0 = scmp.lt.u32.totalorder %s2210_s15, %s2756_s2 }
  0x40   : > { %p2213_p12 = pnand %p2211_p11, %p2478_p8 }
  0x42   : > { %p2214_p13 = pneg %p2213_p12 }
  0x44   : > { %p2219_p2 = pnand %p2217_p0, %p2214_p13 }
  0x46   : > { %2222 = shalt.err (!%p2219_p2)
}
  0x47   : > { %s2223_s21 = scalar_lea.vmem %s235_s13, 128  ;;  %p2231_p4 = scmp.lt.s32.totalorder %s235_s13, %s235_s13 }
  0x48   : > { %p2224_p5 = scmp.ne.s32.totalorder %s235_s13, %s2223_s21  ;;  %p2232_p10 = scmp.lt.s32.totalorder %s2223_s21, %s2223_s21 }
  0x4a   : > { %p2226_p7 = pnand %p2224_p5, %p2478_p8  ;;  %p2233_p1 = por %p2232_p10, %p2231_p4 }
  0x4c   : > { %p2227_p9 = pneg %p2226_p7 }
  0x4e   : > { %p2234_p3 = pnand %p2233_p1, %p2227_p9 }
  0x50   : > { %2237 = shalt.err (!%p2234_p3)
}
  0x51   : > { %1998 = dma.hbm_to_vmem [thread:$0]  (!%p2462_p6), %s2756_s2, 128, %s235_s13, [#allocation6]  }
  0x52   : > { %s2379_s22 = smov [#allocation10]   ;;  %s2238_s12 = scalar_lea.hbm %s2759_s5, 2048 }
  0x53   : > { %s260_s23 = sshll.u32 %s2379_s22, 4  ;;  %p2239_p11 = scmp.ne.s32.totalorder %s2759_s5, %s2238_s12  ;;  %s261_s23 = int_to_ptr.vmem [resolvable:$true] %s260_s23 }
  0x54   : > { %p2245_p12 = scmp.lt.u32.totalorder %s2238_s12, %s2759_s5 }
  0x55   : > { %p2241_p1 = pnand %p2239_p11, %p2478_p8 }
  0x57   : > { %p2242_p3 = pneg %p2241_p1 }
  0x59   : > { %p2247_p13 = pnand %p2245_p12, %p2242_p3 }
  0x5b   : > { %2250 = shalt.err (!%p2247_p13)
}
  0x5c   : > { %s2251_s13 = scalar_lea.vmem %s261_s23, 2048  ;;  %p2259_p7 = scmp.lt.s32.totalorder %s261_s23, %s261_s23 }
  0x5d   : > { %p2252_p0 = scmp.ne.s32.totalorder %s261_s23, %s2251_s13  ;;  %p2260_p9 = scmp.lt.s32.totalorder %s2251_s13, %s2251_s13 }
  0x5f   : > { %p2254_p2 = pnand %p2252_p0, %p2478_p8  ;;  %p2261_p4 = por %p2260_p9, %p2259_p7 }
  0x61   : > { %p2255_p5 = pneg %p2254_p2 }
  0x63   : > { %p2262_p10 = pnand %p2261_p4, %p2255_p5 }
  0x65   : > { %2265 = shalt.err (!%p2262_p10)
}
  0x66   : > { %s2380_s18 = smov 128   ;;  %s2381_s19 = smov 8  }
  0x67   : > { %2004 = dma.hbm_to_vmem [thread:$0]  (!%p2462_p6), %s2759_s5, 2048, %s261_s23, [#allocation9], %s2380_s18, %s2380_s18, %s2381_s19  }
  0x68   : > { %s1745_s10 = sadd.s32 4294967294, %s2370_s27   ;;  %s2561_s29 = sadd.s32 1, %s2370_s27  }
  0x69   : > { %s29_s22 = ssub.s32 %s2370_s27, %s2561_s29  ;;  %s32_s28 = sadd.s32 1, %s2366_s26 }
  0x6a   : > { %p30_p8 = scmp.eq.s32.totalorder %s29_s22, 0  ;;  %p39_p11 = scmp.ne.s32.totalorder %s2366_s26, %s2362_s25 }
  0x6b   : > { %p40_p1 = scmp.eq.s32.totalorder %s2370_s27, 0  ;;  %p45_p3 = scmp.ne.s32.totalorder %s2362_s25, %s2358_s24 }
  0x6c   : > { %s2572_s9 = scalar_select %p30_p8, %s2366_s26, %s32_s28  }
  0x6d   : > { %p2574_p12 = por %p40_p1, %p39_p11  ;;  %p2769_p13 = scmp.eq.s32.totalorder %s2446_s30, 0 }
  0x6e   : > { %p195_p0 = scmp.eq.s32.totalorder %s2446_s30, 1  ;;  %p201_p2 = scmp.eq.s32.totalorder %s1745_s10, 1 }
  0x6f   : > { %p2580_p6 = por %p2769_p13, %p45_p3  ;;  %p2017_p5 = scmp.lt.s32.totalorder %s2370_s27, 2 }
  0x70   : > { %s277_s12 = sand.u32 1, %s2366_s26   ;;  %p2587_p7 = por %p195_p0, %p39_p11 }
  0x71   : > { %p2591_p9 = por %p201_p2, %p45_p3  ;;  %s1752_s16 = sshll.u32 %s277_s12, 2 }
  0x72   : > { %s2771_s14 = scalar_select %p2587_p7, 1, 0 }
  0x73   : > { %s2772_s15 = scalar_select %p2591_p9, 1, 0 }
  0x74   : > { %s1753_s17 = sshll.u32 %s2370_s27, 6  ;;  %s281_s20 = scalar_lea.vmem [#allocation2], %s1752_s16 }
  0x75   : > { %s2599_s19 = scalar_lea.hbm %s2754_s0, %s1753_s17  ;;  %s288_s21 = sshll.u32 %s281_s20, 4  ;;  %s2601_s21 = int_to_ptr.vmem [resolvable:$true] %s288_s21 }
  0x76   : > { %p2605_p4 = pnand %p2017_p5, %p2574_p12  ;;  %s278_s22 = scalar_lea.sflag [#allocation3], %s277_s12 }
  0x77   : > { %s2266_s28 = scalar_lea.hbm %s2599_s19, 64  ;;  %s2271_s13 = scalar_lea.hbm %s2754_s0, 128 }
  0x78   : > { %p2267_p10 = scmp.ne.s32.totalorder %s2599_s19, %s2266_s28  ;;  %p2268_p8 = pneg %p2605_p4 }
  0x79   : > { %p2272_p3 = scmp.lt.u32.totalorder %s2599_s19, %s2754_s0  ;;  %p2273_p12 = scmp.lt.u32.totalorder %s2271_s13, %s2266_s28 }
  0x7a   : > { %p2269_p11 = pnand %p2268_p8, %p2267_p10  ;;  %p2275_p0 = scmp.lt.u32.totalorder %s2266_s28, %s2599_s19 }
  0x7b   : > { %p2274_p13 = por %p2273_p12, %p2272_p3 }
  0x7c   : > { %p2270_p1 = pneg %p2269_p11 }
  0x7d   : > { %p2276_p2 = por %p2275_p0, %p2274_p13 }
  0x7f   : > { %p2277_p5 = pnand %p2276_p2, %p2270_p1 }
  0x81   : > { %2280 = shalt.err (!%p2277_p5)
}
  0x82   : > { %s2281_s12 = scalar_lea.vmem %s2601_s21, 64  ;;  %s2382_s20 = smov [#allocation2]  }
  0x83   : > { %p2282_p10 = scmp.ne.s32.totalorder %s2601_s21, %s2281_s12  ;;  %s2286_s16 = sshll.u32 %s2382_s20, 4  ;;  %s2287_s16 = int_to_ptr.vmem [resolvable:$false] %s2286_s16 }
  0x84   : > { %s2288_s17 = scalar_lea.vmem %s2287_s16, 128  ;;  %p2289_p7 = scmp.lt.s32.totalorder %s2601_s21, %s2287_s16 }
  0x85   : > { %p2284_p11 = pnand %p2282_p10, %p2268_p8  ;;  %p2290_p3 = scmp.lt.s32.totalorder %s2288_s17, %s2281_s12 }
  0x87   : > { %p2285_p9 = pneg %p2284_p11  ;;  %p2291_p12 = por %p2290_p3, %p2289_p7 }
  0x89   : > { %p2292_p13 = pnand %p2291_p12, %p2285_p9 }
  0x8b   : > { %2295 = shalt.err (!%p2292_p13)
}
  0x8c   : > { %2008 = dma.hbm_to_vmem [thread:$0]  (!%p2605_p4), %s2599_s19, 64, %s2601_s21, %s278_s22  }
  0x8d   : > { %p2774_p1 = scmp.ne.s32.totalorder %s2765_s8, 0 }
  0x8e   : > { %s2637_s28 = sand.u32 (!%p2774_p1), 1, %s2362_s25  }
  0x8f   : > { %297 = sbr.rel (%p2774_p1) target bundleno = 899 (0x383), region = 48  ;;  %s1755_s13 = sshll.u32 (!%p2774_p1), %s2637_s28, 2 }
  0x90   : > { %s300_s11 = scalar_lea.sflag (!%p2774_p1), [#allocation3], %s2637_s28  ;;  %s2641_s18 = scalar_lea.vmem (!%p2774_p1), [#allocation2], %s1755_s13 }
  0x96   : > { %2341 = dma.done.wait (%p2580_p6), %s300_s11, 64  }
  0x97   : > { %2343 = vsyncadd (%p2580_p6), %s300_s11, 4294967232  ;;  %p2775_p7 = scmp.eq.s32.totalorder %s2446_s30, 0 }
  0x99   : > { %2345 = dma.done.wait (%p2775_p7), [#allocation6], 4224   ;;  %p2776_p9 = pmov %p2775_p7 }
  0x9a   : > { %p2777_p4 = pmov %p2775_p7 }
  0x9b   : > { %2347 = vsyncadd (%p2776_p9), [#allocation6], 4294963072 }
  0x9c   : > { %2349 = dma.done.wait (%p2777_p4), [#allocation9], 10240   ;;  %p2778_p8 = pmov %p2777_p4 }
  0x9d   : > { %v2383_v0 = vmov 0   ;;  %v352_v1 = vld [vmem:[#allocation5] sm:$0xff]  ;;  %v354_v14 = vld [vmem:[#allocation5 + $0x10] sm:$0xff]  ;;  %v353_v25 = vld [vmem:[#allocation5 + $0x8] sm:$0xff]  ;;  %vm586_vm0 = vcmask 523264   ;;  %s1760_s10 = sshll.u32 %s2637_s28, 4 }
  0x9e   : > { %2351 = vsyncadd (%p2778_p8), [#allocation9], 4294957056  ;;  %622 = vmatprep.mubr.bf16.mxu1 %v2383_v0  ;;  %704 = vmatprep.mubr.bf16.mxu0 %v2383_v0  ;;  %v356_v2 = vld [vmem:[#allocation5 + $0x20] sm:$0xff]  ;;  %v358_v15 = vld [vmem:[#allocation5 + $0x30] sm:$0xff]  ;;  %s1883_s22 = sshll.u32 %s2446_s30, 8  ;;  %s349_s12 = scalar_lea.vmem [#allocation11], %s1760_s10 }
  0x9f   : > { %v360_v3 = vld [vmem:[#allocation5 + $0x40] sm:$0xff]  ;;  %v1762_v4 = vcombine.high %v352_v1, %v356_v2  ;;  %v1761_v5 = vcombine.low %v352_v1, %v356_v2  ;;  %v362_v16 = vld [vmem:[#allocation5 + $0x50] sm:$0xff]  ;;  %v1766_v18 = vcombine.high %v354_v14, %v358_v15  ;;  %v1765_v19 = vcombine.low %v354_v14, %v358_v15  ;;  %v357_v26 = vld [vmem:[#allocation5 + $0x28] sm:$0xff]  ;;  %s1637_s20 = sshll.u32 %s349_s12, 4  ;;  %s2710_s13 = scalar_lea.hbm %s2761_s7, %s1883_s22  ;;  %s2712_s20 = int_to_ptr.vmem [resolvable:$true] %s1637_s20 }
  0xa0   : > { %v364_v6 = vld [vmem:[#allocation5 + $0x60] sm:$0xff]  ;;  %v366_v17 = vld [vmem:[#allocation5 + $0x70] sm:$0xff]  ;;  %v1764_v32 = vcombine.high %v353_v25, %v357_v26  ;;  %v361_v33 = vld [vmem:[#allocation5 + $0x48] sm:$0xff]  ;;  %v1763_v38 = vcombine.low %v353_v25, %v357_v26  ;;  %s1623_s30 = scalar_lea.sflag [#allocation4], %s2637_s28  ;;  %s2296_s11 = scalar_lea.vmem %s2712_s20, 256 }
  0xa1   : > { %v1770_v7 = vcombine.high %v360_v3, %v364_v6  ;;  %v368_v8 = vld [vmem:[#allocation5 + $0x80] sm:$0xff]  ;;  %590 = vmatprep.subr.bf16.mxu1 %v1762_v4  ;;  %v1769_v10 = vcombine.low %v360_v3, %v364_v6  ;;  %v1774_v20 = vcombine.high %v362_v16, %v366_v17  ;;  %v370_v22 = vld [vmem:[#allocation5 + $0x90] sm:$0xff]  ;;  %672 = vmatprep.subr.bf16.mxu0 %v1766_v18  ;;  %v365_v34 = vld [vmem:[#allocation5 + $0x68] sm:$0xff]  ;;  %p2297_p6 = scmp.ne.s32.totalorder %s2712_s20, %s2296_s11  ;;  %p2779_p0 = scmp.ne.s32.totalorder %s2771_s14, 0 }
  0xa2   : > { %v372_v9 = vld [vmem:[#allocation5 + $0xa0] sm:$0xff]  ;;  %591 = vmatpush1.bf16.msra.mxu1 %v1761_v5  ;;  %v374_v23 = vld [vmem:[#allocation5 + $0xb0] sm:$0xff]  ;;  %673 = vmatpush1.bf16.msra.mxu0 %v1765_v19  ;;  %v1773_v27 = vcombine.low %v362_v16, %v366_v17  ;;  %v2658_v37 = vld [vmem:[%s2641_s18] sm:$0xf]  ;;  %v1772_v39 = vcombine.high %v361_v33, %v365_v34  ;;  %v1771_v44 = vcombine.low %v361_v33, %v365_v34  ;;  %s2384_s18 = smov [#allocation11]  }
  0xa3   : > { %592 = vmatprep.subr.bf16.mxu1 %v1770_v7  ;;  %v1778_v11 = vcombine.high %v368_v8, %v372_v9  ;;  %v376_v12 = vld [vmem:[#allocation5 + $0xc0] sm:$0xff]  ;;  %v1777_v21 = vcombine.low %v368_v8, %v372_v9  ;;  %674 = vmatprep.subr.bf16.mxu0 %v1774_v20  ;;  %v1782_v28 = vcombine.high %v370_v22, %v374_v23  ;;  %v378_v29 = vld [vmem:[#allocation5 + $0xd0] sm:$0xff]  ;;  %v369_v40 = vld [vmem:[#allocation5 + $0x88] sm:$0xff]  ;;  %p2298_p2 = pnand %p2297_p6, %p2779_p0  ;;  %s2300_s8 = sshll.u32 %s2384_s18, 4  ;;  %s2301_s8 = int_to_ptr.vmem [resolvable:$false] %s2300_s8 }
  0xa4   : > { %v380_v13 = vld [vmem:[#allocation5 + $0xe0] sm:$0xff]  ;;  %v382_v31 = vld [vmem:[#allocation5 + $0xf0] sm:$0xff]  ;;  %v1781_v35 = vcombine.low %v370_v22, %v374_v23  ;;  %v373_v41 = vld [vmem:[#allocation5 + $0xa8] sm:$0xff]  ;;  %s2302_s23 = scalar_lea.vmem %s2301_s8, 512  ;;  %p2303_p10 = scmp.lt.s32.totalorder %s2712_s20, %s2301_s8 }
  0xa5   : > { %v1786_v24 = vcombine.high %v376_v12, %v380_v13  ;;  %v1785_v30 = vcombine.low %v376_v12, %v380_v13  ;;  %v1790_v36 = vcombine.high %v378_v29, %v382_v31  ;;  %v1789_v42 = vcombine.low %v378_v29, %v382_v31  ;;  %v2066_v43 = vld [vmem:[#allocation8 + $0x40] sm:$0xff]   ;;  %v2068_v49 = vld [vmem:[#allocation8 + $0x48] sm:$0xff]   ;;  %v355_v51 = vld [vmem:[#allocation5 + $0x18] sm:$0xff]  ;;  %p2299_p5 = pneg %p2298_p2  ;;  %p2304_p11 = scmp.lt.s32.totalorder %s2302_s23, %s2296_s11 }
  0xa6   : > { %593 = vmatpush1.bf16.msra.mxu1 %v1769_v10  ;;  %675 = vmatpush1.bf16.msra.mxu0 %v1773_v27  ;;  %v377_v45 = vld [vmem:[#allocation5 + $0xc8] sm:$0xff]  ;;  %v1780_v46 = vcombine.high %v369_v40, %v373_v41  ;;  %v1779_v50 = vcombine.low %v369_v40, %v373_v41  ;;  %v359_v53 = vld [vmem:[#allocation5 + $0x38] sm:$0xff]  ;;  %v2069_v54 = vld [vmem:[#allocation8 + $0x8] sm:$0xff]  }
  0xa7   : > { %594 = vmatprep.subr.bf16.mxu1 %v1778_v11  ;;  %676 = vmatprep.subr.bf16.mxu0 %v1782_v28  ;;  %v381_v47 = vld [vmem:[#allocation5 + $0xe8] sm:$0xff]  ;;  %v2070_v55 = vld [vmem:[#allocation8 + $0x50] sm:$0xff]   ;;  %v1768_v60 = vcombine.high %v355_v51, %v359_v53  ;;  %v2072_v61 = vld [vmem:[#allocation8 + $0x58] sm:$0xff]   ;;  %v1767_v62 = vcombine.low %v355_v51, %v359_v53  ;;  %p2305_p3 = por %p2304_p11, %p2303_p10 }
  0xa8   : > { %v2067_v48 = vld [vmem:[#allocation8] sm:$0xff]   ;;  %v1788_v52 = vcombine.high %v377_v45, %v381_v47  ;;  %v1787_v56 = vcombine.low %v377_v45, %v381_v47  ;;  %v363_v57 = vld [vmem:[#allocation5 + $0x58] sm:$0xff]  ;;  %v2073_v2 = vld [vmem:[#allocation8 + $0x18] sm:$0xff]  }
  0xa9   : > { %v367_v58 = vld [vmem:[#allocation5 + $0x78] sm:$0xff]  ;;  %v2074_v4 = vld [vmem:[#allocation8 + $0x60] sm:$0xff]   ;;  %v2078_v10 = vld [vmem:[#allocation8 + $0x68] sm:$0xff]   ;;  %p2306_p12 = pnand %p2305_p3, %p2299_p5 }
  0xaa   : > { %595 = vmatpush1.bf16.msra.mxu1 %v1777_v21  ;;  %677 = vmatpush1.bf16.msra.mxu0 %v1781_v35  ;;  %v2071_v59 = vld [vmem:[#allocation8 + $0x10] sm:$0xff]   ;;  %v1776_v3 = vcombine.high %v363_v57, %v367_v58  ;;  %v1775_v5 = vcombine.low %v363_v57, %v367_v58  ;;  %v2076_v8 = vld [vmem:[#allocation8 + $0x20] sm:$0xff]   ;;  %v2080_v12 = vld [vmem:[#allocation8 + $0x28] sm:$0xff]  }
  0xab   : > { %596 = vmatprep.subr.bf16.mxu1 %v1786_v24  ;;  %678 = vmatprep.subr.bf16.mxu0 %v1790_v36  ;;  %v371_v63 = vld [vmem:[#allocation5 + $0x98] sm:$0xff]  ;;  %v2075_v14 = vld [vmem:[#allocation8 + $0xc0] sm:$0xff]   ;;  %v2079_v17 = vld [vmem:[#allocation8 + $0xc8] sm:$0xff]  }
  0xac   : > { %v375_v1 = vld [vmem:[#allocation5 + $0xb8] sm:$0xff]  ;;  %v2077_v16 = vld [vmem:[#allocation8 + $0x80] sm:$0xff]   ;;  %v2081_v18 = vld [vmem:[#allocation8 + $0x88] sm:$0xff]  }
  0xad   : > { %v379_v6 = vld [vmem:[#allocation5 + $0xd8] sm:$0xff]  ;;  %v1784_v9 = vcombine.high %v371_v63, %v375_v1  ;;  %v1783_v11 = vcombine.low %v371_v63, %v375_v1  ;;  %v2086_v23 = vld [vmem:[#allocation8 + $0x78] sm:$0xff]   ;;  %v2090_v27 = vld [vmem:[#allocation8 + $0xe0] sm:$0xff]  }
  0xae   : > { %597 = vmatpush1.bf16.msra.mxu1 %v1785_v30  ;;  %679 = vmatpush1.bf16.msra.mxu0 %v1789_v42  ;;  %v383_v7 = vld [vmem:[#allocation5 + $0xf8] sm:$0xff]  ;;  %v2087_v24 = vld [vmem:[#allocation8 + $0xd8] sm:$0xff]   ;;  %v2091_v28 = vld [vmem:[#allocation8 + $0x140] sm:$0xff]  }
  0xaf   : > { %631 = vmatprep.subr.bf16.mxu1 %v1764_v32  ;;  %1884 = vmatprep.subr.bf16.mxu0 %v2066_v43  ;;  %v1792_v13 = vcombine.high %v379_v6, %v383_v7  ;;  %v1791_v15 = vcombine.low %v379_v6, %v383_v7  ;;  %v2082_v19 = vld [vmem:[#allocation8 + $0x70] sm:$0xff]   ;;  %v2088_v25 = vld [vmem:[#allocation8 + $0x38] sm:$0xff]   ;;  %v2092_v29 = vld [vmem:[#allocation8 + $0xa0] sm:$0xff]  }
  0xb0   : > { %v2083_v20 = vld [vmem:[#allocation8 + $0xd0] sm:$0xff]   ;;  %v2089_v26 = vld [vmem:[#allocation8 + $0x98] sm:$0xff]   ;;  %v2094_v30 = vld [vmem:[#allocation8 + $0xe8] sm:$0xff]  }
  0xb1   : > { %1793 = vmatmul.mubr.msk.bf16.vlgmr.msra.gmra.mrb[0].mxu1 %vm586_vm0, %v2658_v37  ;;  %1795 = vmatmul.mubr.msk.bf16.vlgmr.msra.gmra.mrb[0].mxu0 %vm586_vm0, %v2658_v37  ;;  %v2084_v21 = vld [vmem:[#allocation8 + $0x30] sm:$0xff]   ;;  %v2096_v31 = vld [vmem:[#allocation8 + $0xa8] sm:$0xff]   ;;  %v2102_v34 = vld [vmem:[#allocation8 + $0xf8] sm:$0xff]  }
  0xb2   : > { %632 = vmatpush1.bf16.msra.mxu1 %v1763_v38  ;;  %663 = vmatprep.mubr.bf16.mxu1 %v2383_v0  ;;  %v2085_v22 = vld [vmem:[#allocation8 + $0x90] sm:$0xff]   ;;  %v2104_v35 = vld [vmem:[#allocation8 + $0xb8] sm:$0xff]   ;;  %v2107_v36 = vld [vmem:[#allocation8 + $0x1c0] sm:$0xff]  }
  0xb3   : > { %633 = vmatprep.subr.bf16.mxu1 %v1772_v39  ;;  %1885 = vmatpush3.bf16.msra.mxu0 %v2067_v48  ;;  %v2098_v32 = vld [vmem:[#allocation8 + $0xf0] sm:$0xff]   ;;  %v2673_v40 = vld [vmem:[#allocation7] sm:$0xff]  ;;  %v2093_v58 = vld [vmem:[#allocation8 + $0x100] sm:$0xff]  }
  0xb4   : > { %1886 = vmatprep.subr.bf16.mxu0 %v2068_v49  ;;  %v2100_v33 = vld [vmem:[#allocation8 + $0xb0] sm:$0xff]  }
  0xb5   : > { %v2099_v6 = vld [vmem:[#allocation8 + $0x150] sm:$0xff]  }
  0xb6   : > { %634 = vmatpush1.bf16.msra.mxu1 %v1771_v44 }
  0xb7   : > { %635 = vmatprep.subr.bf16.mxu1 %v1780_v46  ;;  %1887 = vmatpush3.bf16.msra.mxu0 %v2069_v54 }
  0xb8   : > { %1888 = vmatprep.subr.bf16.mxu0 %v2070_v55 }
  0xba   : > { %636 = vmatpush1.bf16.msra.mxu1 %v1779_v50 }
  0xbb   : > { %637 = vmatprep.subr.bf16.mxu1 %v1788_v52  ;;  %1889 = vmatpush3.bf16.msra.mxu0 %v2071_v59 }
  0xbc   : > { %1890 = vmatprep.subr.bf16.mxu0 %v2072_v61  ;;  %v2095_v61 = vld [vmem:[#allocation8 + $0x148] sm:$0xff]  }
  0xbe   : > { %638 = vmatpush1.bf16.msra.mxu1 %v1787_v56 }
  0xbf   : > { %713 = vmatprep.subr.bf16.mxu1 %v1768_v60  ;;  %1891 = vmatpush3.bf16.msra.mxu0 %v2073_v2 }
  0xc0   : > { %1892 = vmatprep.subr.bf16.mxu0 %v2074_v4 }
  0xc1   : > { %1794 = vmatmul.mubr.msk.bf16.vlgmr.msra.gmra.mrb[4].mxu1 %vm586_vm0, %v2658_v37 }
  0xc2   : > { %714 = vmatpush1.bf16.msra.mxu1 %v1767_v62  ;;  %745 = vmatprep.mubr.bf16.mxu1 %v2383_v0 }
  0xc3   : > { %715 = vmatprep.subr.bf16.mxu1 %v1776_v3  ;;  %1893 = vmatpush3.bf16.msra.mxu0 %v2076_v8 }
  0xc4   : > { %1894 = vmatprep.subr.bf16.mxu0 %v2078_v10 }
  0xc6   : > { %716 = vmatpush1.bf16.msra.mxu1 %v1775_v5  ;;  %v2097_v5 = vld [vmem:[#allocation8 + $0x108] sm:$0xff]  }
  0xc7   : > { %717 = vmatprep.subr.bf16.mxu1 %v1784_v9  ;;  %1895 = vmatpush3.bf16.msra.mxu0 %v2080_v12 }
  0xc8   : > { %1896 = vmatprep.subr.bf16.mxu0 %v2082_v19 }
  0xca   : > { %718 = vmatpush1.bf16.msra.mxu1 %v1783_v11  ;;  %v2101_v11 = vld [vmem:[#allocation8 + $0x110] sm:$0xff]  }
  0xcb   : > { %719 = vmatprep.subr.bf16.mxu1 %v1792_v13  ;;  %1897 = vmatpush3.bf16.msra.mxu0 %v2084_v21  ;;  %v2103_v13 = vld [vmem:[#allocation8 + $0x158] sm:$0xff]  }
  0xcc   : > { %1898 = vmatprep.subr.bf16.mxu0 %v2086_v23  ;;  %v2106_v23 = vld [vmem:[#allocation8 + $0x160] sm:$0xff]  }
  0xce   : > { %720 = vmatpush1.bf16.msra.mxu1 %v1791_v15 }
  0xcf   : > { %1906 = vmatprep.subr.bf16.mxu1 %v2075_v14  ;;  %1899 = vmatpush3.bf16.msra.mxu0 %v2088_v25 }
  0xd0   : > { %1928 = vmatprep.subr.bf16.mxu0 %v2091_v28  ;;  %v2109_v28 = vld [vmem:[#allocation8 + $0x180] sm:$0xff]  }
  0xd1   : > { %1796 = vmatmul.mubr.msk.bf16.vlgmr.msra.gmra.mrb[8].mxu1 %vm586_vm0, %v2658_v37  ;;  %v386_v37 = vlaneseq }
  0xd2   : > { %1907 = vmatpush3.bf16.msra.mxu1 %v2077_v16 }
  0xd3   : > { %1908 = vmatprep.subr.bf16.mxu1 %v2079_v17  ;;  %v2670_v38 = vshrl.u32 %v386_v37, 7  ;;  %v2114_v37 = vld [vmem:[#allocation8 + $0x170] sm:$0xff]  }
  0xd5   : > { %v388_v39 = vsub.s32 0, %v2670_v38  ;;  %v392_v41 = vsub.s32 1, %v2670_v38  ;;  %v408_v45 = vsub.s32 5, %v2670_v38  ;;  %v396_v1 = vsub.s32 2, %v2670_v38 }
  0xd6   : > { %1909 = vmatpush3.bf16.msra.mxu1 %v2081_v18  ;;  %v400_v3 = vsub.s32 3, %v2670_v38  ;;  %v404_v21 = vsub.s32 4, %v2670_v38 }
  0xd7   : > { %1910 = vmatprep.subr.bf16.mxu1 %v2083_v20  ;;  %v389_v42 = vrot.slane %v2673_v40, %v388_v39  ;;  %v393_v43 = vrot.slane %v2673_v40, %v392_v41  ;;  %v409_v53 = vrot.slane %v2673_v40, %v408_v45  ;;  %v397_v8 = vrot.slane %v2673_v40, %v396_v1  ;;  %v2105_v20 = vld [vmem:[#allocation8 + $0x118] sm:$0xff]   ;;  %v2116_v45 = vld [vmem:[#allocation8 + $0x130] sm:$0xff]   ;;  %v2124_v1 = vld [vmem:[#allocation8 + $0x1e8] sm:$0xff]  }
  0xd8   : > { %v401_v10 = vrot.slane %v2673_v40, %v400_v3  ;;  %v2125_v3 = vld [vmem:[#allocation8 + $0x1a8] sm:$0xff]  }
  0xda   : > { %1911 = vmatpush3.bf16.msra.mxu1 %v2085_v22 }
  0xdb   : > { %1912 = vmatprep.subr.bf16.mxu1 %v2087_v24 }
  0xde   : > { %1913 = vmatpush3.bf16.msra.mxu1 %v2089_v26 }
  0xdf   : > { %1914 = vmatprep.subr.bf16.mxu1 %v2090_v27  ;;  %v2108_v27 = vld [vmem:[#allocation8 + $0x120] sm:$0xff]  }
  0xe2   : > { %1915 = vmatpush3.bf16.msra.mxu1 %v2092_v29  ;;  %v405_v29 = vrot.slane %v2673_v40, %v404_v21  ;;  %v2145_v21 = vld [vmem:[#allocation10 + $0x50] ss:$8 sps:$4 sm:$0xff]  }
  0xe3   : > { %1916 = vmatprep.subr.bf16.mxu1 %v2094_v30 }
  0xe6   : > { %1917 = vmatpush3.bf16.msra.mxu1 %v2096_v31  ;;  %v2110_v31 = vld [vmem:[#allocation8 + $0x168] sm:$0xff]  }
  0xe7   : > { %1918 = vmatprep.subr.bf16.mxu1 %v2098_v32  ;;  %v2111_v32 = vld [vmem:[#allocation8 + $0x1c8] sm:$0xff]  }
  0xea   : > { %1919 = vmatpush3.bf16.msra.mxu1 %v2100_v33  ;;  %v416_v33 = vsub.s32 7, %v2670_v38 }
  0xeb   : > { %1920 = vmatprep.subr.bf16.mxu1 %v2102_v34  ;;  %v2112_v34 = vld [vmem:[#allocation8 + $0x128] sm:$0xff]  }
  0xee   : > { %1921 = vmatpush3.bf16.msra.mxu1 %v2104_v35  ;;  %v2113_v35 = vld [vmem:[#allocation8 + $0x188] sm:$0xff]  }
  0xef   : > { %1950 = vmatprep.subr.bf16.mxu1 %v2107_v36 }
 0x184   : > { %v624_v44 = vpop.f32.mrb[0].mxu1  ;;  %v706_v56 = vpop.f32.mrb[0].mxu0 }
 0x185   : > { %v625_v46 = vadd.f32 %v624_v44, %v389_v42  ;;  %v626_v47 = vpop.f32.mrb[1].mxu1  ;;  %v708_v59 = vpop.f32.mrb[1].mxu0  ;;  %v707_v36 = vadd.f32 %v706_v56, %v405_v29  ;;  %v2115_v42 = vld [vmem:[#allocation8 + $0x1d0] sm:$0xff]  }
 0x186   : > { %v627_v48 = vadd.f32 %v626_v47, %v393_v43  ;;  %v628_v49 = vpop.f32.mrb[2].mxu1  ;;  %v709_v62 = vadd.f32 %v708_v59, %v409_v53  ;;  %v710_v63 = vpop.f32.mrb[2].mxu0  ;;  %v417_v43 = vrot.slane %v2673_v40, %v416_v33  ;;  %v2118_v47 = vld [vmem:[#allocation8 + $0x178] sm:$0xff]   ;;  %v412_v59 = vsub.s32 6, %v2670_v38 }
 0x187   : > { %vm754_vm1 = vcmp.gt.f32.partialorder %v625_v46, 0.0  ;;  %v762_v50 = vmul.f32 0.2, %v625_v46  ;;  %v629_v51 = vpop.f32.mrb[3].mxu1  ;;  %v711_v2 = vpop.f32.mrb[3].mxu0  ;;  %vm758_vm6 = vcmp.gt.f32.partialorder %v707_v36, 0.0 }
 0x188   : > { %vm755_vm2 = vcmp.gt.f32.partialorder %v627_v48, 0.0  ;;  %v763_v52 = vmul.f32 0.2, %v627_v48  ;;  %vm759_vm3 = vcmp.gt.f32.partialorder %v709_v62, 0.0  ;;  %v767_v4 = vmul.f32 0.2, %v709_v62 }
 0x189   : > { %v770_v54 = vsel %vm754_vm1, %v625_v46, %v762_v50  ;;  %v766_v44 = vmul.f32 0.2, %v707_v36  ;;  %v2117_v46 = vld [vmem:[#allocation8 + $0x190] sm:$0xff]   ;;  %v413_v2 = vrot.slane %v2673_v40, %v412_v59 }
 0x18a   : > { %v771_v55 = vsel %vm755_vm2, %v627_v48, %v763_v52  ;;  %v778_v60 = vpack.c.bf16 %v770_v54, %v770_v54  ;;  %v775_v7 = vsel %vm759_vm3, %v709_v62, %v767_v4  ;;  %v2119_v48 = vld [vmem:[#allocation8 + $0x1d8] sm:$0xff]   ;;  %v2123_v62 = vld [vmem:[#allocation8 + $0x1a0] sm:$0xff]   ;;  %v2126_v4 = vld [vmem:[#allocation8 + $0x1f0] sm:$0xff]  }
 0x18b   : > { %v779_v57 = vpack.c.bf16 %v771_v55, %v771_v55  ;;  %v783_v9 = vpack.c.bf16 %v775_v7, %v775_v7  ;;  %v774_v53 = vsel %vm758_vm6, %v707_v36, %v766_v44  ;;  %v2120_v54 = vld [vmem:[#allocation8 + $0x138] sm:$0xff]  }
 0x18c   : > { %v2121_v55 = vld [vmem:[#allocation8 + $0x198] sm:$0xff]  }
 0x18d   : > { %1337 = vmatprep.mubr.bf16.mxu0 %v779_v57  ;;  %v2122_v57 = vld [vmem:[#allocation8 + $0x1e0] sm:$0xff]   ;;  %v2128_v7 = vld [vmem:[#allocation8 + $0x1f8] sm:$0xff]  }
 0x18e   : > { %1338 = vmatmul.mubr.bf16.vlgmr.msra.gmra.mrb[4].mxu0 %v778_v60  ;;  %v782_v60 = vpack.c.bf16 %v774_v53, %v774_v53 }
 0x18f   : > { %1929 = vmatpush3.bf16.msra.mxu0 %v2093_v58  ;;  %1417 = vmatprep.mubr.bf16.mxu0 %v783_v9  ;;  %v2129_v9 = vld [vmem:[#allocation8 + $0x1b8] sm:$0xff]  }
 0x190   : > { %1930 = vmatprep.subr.bf16.mxu0 %v2095_v61 }
 0x193   : > { %1931 = vmatpush3.bf16.msra.mxu0 %v2097_v5 }
 0x194   : > { %v665_v12 = vpop.f32.mrb[4].mxu1  ;;  %1932 = vmatprep.subr.bf16.mxu0 %v2099_v6  ;;  %v2127_v6 = vld [vmem:[#allocation8 + $0x1b0] sm:$0xff]  }
 0x195   : > { %v666_v14 = vadd.f32 %v665_v12, %v397_v8  ;;  %v667_v15 = vpop.f32.mrb[5].mxu1  ;;  %v2132_v12 = vld [vmem:[#allocation10 + $0x4] ss:$8 sps:$4 sm:$0xff]  }
 0x196   : > { %v668_v16 = vadd.f32 %v667_v15, %v401_v10  ;;  %v669_v17 = vpop.f32.mrb[6].mxu1  ;;  %v2136_v15 = vld [vmem:[#allocation10 + $0x20] ss:$8 sps:$4 sm:$0xff]  }
 0x197   : > { %vm756_vm4 = vcmp.gt.f32.partialorder %v666_v14, 0.0  ;;  %v764_v18 = vmul.f32 0.2, %v666_v14  ;;  %1933 = vmatpush3.bf16.msra.mxu0 %v2101_v11  ;;  %v670_v19 = vpop.f32.mrb[7].mxu1  ;;  %v2130_v11 = vld [vmem:[#allocation10] ss:$8 sps:$4 sm:$0xff]  }
 0x198   : > { %vm757_vm5 = vcmp.gt.f32.partialorder %v668_v16, 0.0  ;;  %v765_v22 = vmul.f32 0.2, %v668_v16  ;;  %1934 = vmatprep.subr.bf16.mxu0 %v2103_v13  ;;  %v2135_v13 = vld [vmem:[#allocation10 + $0x14] ss:$8 sps:$4 sm:$0xff]  }
 0x199   : > { %v772_v24 = vsel %vm756_vm4, %v666_v14, %v764_v18  ;;  %v2138_v14 = vld [vmem:[#allocation10 + $0x24] ss:$8 sps:$4 sm:$0xff]   ;;  %v2141_v17 = vld [vmem:[#allocation10 + $0x34] ss:$8 sps:$4 sm:$0xff]   ;;  %v2142_v19 = vld [vmem:[#allocation10 + $0x40] ss:$8 sps:$4 sm:$0xff]  }
 0x19a   : > { %v773_v25 = vsel %vm757_vm5, %v668_v16, %v765_v22  ;;  %v780_v30 = vpack.c.bf16 %v772_v24, %v772_v24  ;;  %v2139_v16 = vld [vmem:[#allocation10 + $0x30] ss:$8 sps:$4 sm:$0xff]   ;;  %v2144_v18 = vld [vmem:[#allocation10 + $0x44] ss:$8 sps:$4 sm:$0xff]   ;;  %v2153_v24 = vld [vmem:[#allocation10 + $0x74] ss:$8 sps:$4 sm:$0xff]  }
 0x19b   : > { %1935 = vmatpush3.bf16.msra.mxu0 %v2105_v20  ;;  %v781_v26 = vpack.c.bf16 %v773_v25, %v773_v25  ;;  %v2147_v20 = vld [vmem:[#allocation10 + $0x54] ss:$8 sps:$4 sm:$0xff]   ;;  %v2150_v22 = vld [vmem:[#allocation10 + $0x64] ss:$8 sps:$4 sm:$0xff]   ;;  %v2151_v25 = vld [vmem:[#allocation10 + $0x70] ss:$8 sps:$4 sm:$0xff]  }
 0x19c   : > { %1936 = vmatprep.subr.bf16.mxu0 %v2106_v23  ;;  %v2148_v23 = vld [vmem:[#allocation10 + $0x60] ss:$8 sps:$4 sm:$0xff]  }
 0x19d   : > { %1377 = vmatprep.mubr.bf16.mxu1 %v781_v26 }
 0x19e   : > { %1378 = vmatmul.mubr.bf16.vlgmr.msra.gmra.mrb[12].mxu1 %v780_v30 }
 0x19f   : > { %1937 = vmatpush3.bf16.msra.mxu0 %v2108_v27  ;;  %1951 = vmatpush3.bf16.msra.mxu1 %v2109_v28 }
 0x1a0   : > { %1938 = vmatprep.subr.bf16.mxu0 %v2110_v31  ;;  %1952 = vmatprep.subr.bf16.mxu1 %v2111_v32  ;;  %v1797_v31 = vld [vmem:[%s2758_s4] ss:$0 sm:$0xff] }
 0x1a3   : > { %1939 = vmatpush3.bf16.msra.mxu0 %v2112_v34  ;;  %1953 = vmatpush3.bf16.msra.mxu1 %v2113_v35 }
 0x1a4   : > { %1940 = vmatprep.subr.bf16.mxu0 %v2114_v37  ;;  %1954 = vmatprep.subr.bf16.mxu1 %v2115_v42  ;;  %v747_v49 = vpop.f32.mrb[8].mxu1 }
 0x1a5   : > { %v749_v50 = vpop.f32.mrb[9].mxu1  ;;  %v748_v5 = vadd.f32 %v747_v49, %v413_v2 }
 0x1a6   : > { %v750_v51 = vadd.f32 %v749_v50, %v417_v43  ;;  %v751_v52 = vpop.f32.mrb[10].mxu1 }
 0x1a7   : > { %1941 = vmatpush3.bf16.msra.mxu0 %v2116_v45  ;;  %1955 = vmatpush3.bf16.msra.mxu1 %v2117_v46  ;;  %v752_v56 = vpop.f32.mrb[11].mxu1  ;;  %v768_v8 = vmul.f32 0.2, %v748_v5  ;;  %vm760_vm8 = vcmp.gt.f32.partialorder %v748_v5, 0.0 }
 0x1a8   : > { %1942 = vmatprep.subr.bf16.mxu0 %v2118_v47  ;;  %1956 = vmatprep.subr.bf16.mxu1 %v2119_v48  ;;  %vm761_vm7 = vcmp.gt.f32.partialorder %v750_v51, 0.0  ;;  %v769_v58 = vmul.f32 0.2, %v750_v51 }
 0x1a9   : > { %v776_v10 = vsel %vm760_vm8, %v748_v5, %v768_v8 }
 0x1aa   : > { %v777_v61 = vsel %vm761_vm7, %v750_v51, %v769_v58  ;;  %v784_v40 = vpack.c.bf16 %v776_v10, %v776_v10  ;;  %v1485_v58 = vld [vmem:[%s2760_s6] sm:$0x3] }
 0x1ab   : > { %1943 = vmatpush3.bf16.msra.mxu0 %v2120_v54  ;;  %1957 = vmatpush3.bf16.msra.mxu1 %v2121_v55  ;;  %v785_v63 = vpack.c.bf16 %v777_v61, %v777_v61  ;;  %v1490_v59 = vrot.slane %v1485_v58, %v388_v39 }
 0x1ac   : > { %1958 = vmatprep.subr.bf16.mxu1 %v2122_v57  ;;  %1577 = vmatprep.subr.bf16.mxu0 %v2132_v12 }
 0x1ad   : > { %1457 = vmatprep.mubr.bf16.mxu1 %v785_v63 }
 0x1ae   : > { %1418 = vmatmul.mubr.bf16.vlgmr.msra.gmra.mrb[8].mxu0 %v782_v60  ;;  %v1494_v60 = vrot.slane %v1485_v58, %v392_v41 }
 0x1af   : > { %1959 = vmatpush3.bf16.msra.mxu1 %v2123_v62  ;;  %1609 = vmatprep.mubr.bf16.mxu0 %v2383_v0  ;;  %v2133_v0 = vld [vmem:[#allocation10 + $0x10] ss:$8 sps:$4 sm:$0xff]  }
 0x1b0   : > { %1960 = vmatprep.subr.bf16.mxu1 %v2124_v1  ;;  %1578 = vmatpush1.bf16.msra.mxu0 %v2130_v11 }
 0x1b1   : > { %1579 = vmatprep.subr.bf16.mxu0 %v2135_v13 }
 0x1b3   : > { %1961 = vmatpush3.bf16.msra.mxu1 %v2125_v3 }
 0x1b4   : > { %1962 = vmatprep.subr.bf16.mxu1 %v2126_v4  ;;  %1580 = vmatpush1.bf16.msra.mxu0 %v2133_v0 }
 0x1b5   : > { %1581 = vmatprep.subr.bf16.mxu0 %v2138_v14 }
 0x1b7   : > { %1963 = vmatpush3.bf16.msra.mxu1 %v2127_v6 }
 0x1b8   : > { %1964 = vmatprep.subr.bf16.mxu1 %v2128_v7  ;;  %1582 = vmatpush1.bf16.msra.mxu0 %v2136_v15 }
 0x1b9   : > { %1583 = vmatprep.subr.bf16.mxu0 %v2141_v17 }
 0x1bb   : > { %1965 = vmatpush3.bf16.msra.mxu1 %v2129_v9 }
 0x1bc   : > { %1584 = vmatpush1.bf16.msra.mxu0 %v2139_v16 }
 0x1bd   : > { %1585 = vmatprep.subr.bf16.mxu0 %v2144_v18 }
 0x1be   : > { %1458 = vmatmul.mubr.bf16.vlgmr.msra.gmra.mrb[16].mxu1 %v784_v40 }
 0x1c0   : > { %1586 = vmatpush1.bf16.msra.mxu0 %v2142_v19 }
 0x1c1   : > { %1587 = vmatprep.subr.bf16.mxu0 %v2147_v20 }
 0x1c4   : > { %1588 = vmatpush1.bf16.msra.mxu0 %v2145_v21 }
 0x1c5   : > { %1589 = vmatprep.subr.bf16.mxu0 %v2150_v22 }
 0x1c8   : > { %1590 = vmatpush1.bf16.msra.mxu0 %v2148_v23 }
 0x1c9   : > { %1591 = vmatprep.subr.bf16.mxu0 %v2153_v24 }
 0x1cc   : > { %1592 = vmatpush1.bf16.msra.mxu0 %v2151_v25 }
 0x261   : > { %v1900_v26 = vpop.f32.mrb[4].mxu0 }
 0x262   : > { %v1901_v27 = vpop.f32.mrb[5].mxu0 }
 0x263   : > { %v1902_v28 = vadd.f32 %v1901_v27, %v1900_v26  ;;  %v1903_v29 = vpop.f32.mrb[6].mxu0 }
 0x264   : > { %v1904_v30 = vpop.f32.mrb[7].mxu0 }
 0x265   : > { %v1340_v34 = vadd.f32 %v1902_v28, %v1797_v31 }
 0x271   : > { %v1922_v32 = vpop.f32.mrb[12].mxu1 }
 0x272   : > { %v1923_v33 = vpop.f32.mrb[13].mxu1 }
 0x273   : > { %v1924_v35 = vadd.f32 %v1923_v33, %v1922_v32  ;;  %v1925_v36 = vpop.f32.mrb[14].mxu1 }
 0x274   : > { %v1926_v37 = vpop.f32.mrb[15].mxu1 }
 0x275   : > { %v1380_v42 = vadd.f32 %v1924_v35, %v1340_v34 }
 0x281   : > { %v1944_v43 = vpop.f32.mrb[8].mxu0 }
 0x282   : > { %v1945_v44 = vpop.f32.mrb[9].mxu0 }
 0x283   : > { %v1946_v45 = vadd.f32 %v1945_v44, %v1944_v43  ;;  %v1947_v46 = vpop.f32.mrb[10].mxu0 }
 0x284   : > { %v1948_v47 = vpop.f32.mrb[11].mxu0 }
 0x285   : > { %v1420_v48 = vadd.f32 %v1946_v45, %v1380_v42 }
 0x291   : > { %v1966_v49 = vpop.f32.mrb[16].mxu1 }
 0x292   : > { %v1967_v50 = vpop.f32.mrb[17].mxu1 }
 0x293   : > { %v1968_v51 = vadd.f32 %v1967_v50, %v1966_v49  ;;  %v1969_v52 = vpop.f32.mrb[18].mxu1 }
 0x294   : > { %v1970_v53 = vpop.f32.mrb[19].mxu1 }
 0x295   : > { %v1460_v54 = vadd.f32 %v1968_v51, %v1420_v48 }
 0x297   : > { %vm1465_vm9 = vcmp.gt.f32.partialorder %v1460_v54, 0.0  ;;  %v1466_v55 = vmul.f32 0.2, %v1460_v54 }
 0x299   : > { %v1467_v56 = vsel %vm1465_vm9, %v1460_v54, %v1466_v55 }
 0x29a   : > { %v1468_v57 = vpack.c.bf16 %v1467_v56, %v1467_v56 }
 0x29c   : > { %1610 = vmatmul.mubr.bf16.vlgmr.msra.gmra.mrb[12].mxu0 %v1468_v57 }
 0x36f   : > { %v1611_v61 = vpop.f32.mrb[12].mxu0 }
 0x370   : > { %v1612_v62 = vadd.f32 %v1611_v61, %v1490_v59  ;;  %v1613_v63 = vpop.f32.mrb[13].mxu0 }
 0x371   : > { %v1614_v1 = vadd.f32 %v1613_v63, %v1494_v60  ;;  %v1615_v2 = vpop.f32.mrb[14].mxu0 }
 0x372   : > { %v1618_v3 = vmax.f32 %v1612_v62, 0.0  ;;  %v1616_v4 = vpop.f32.mrb[15].mxu0 }
 0x373   : > { %v1619_v5 = vmax.f32 %v1614_v1, 0.0 }
 0x374   : > { %1620 = vst [vmem:[%s349_s12] sm:$0xff] %v1618_v3 }
 0x375   : > { %1621 = vst [vmem:[%s349_s12 + $0x8] sm:$0xff] %v1619_v5 }
 0x376   : > { %2309 = shalt.err (!%p2306_p12)
}
 0x377   : > { %s2310_s28 = scalar_lea.hbm %s2710_s13, 256  ;;  %s2314_s10 = scalar_lea.hbm %s2761_s7, 512 }
 0x378   : > { %p2311_p13 = scmp.ne.s32.totalorder %s2710_s13, %s2310_s28  ;;  %p2315_p9 = scmp.lt.u32.totalorder %s2710_s13, %s2761_s7 }
 0x379   : > { %p2316_p4 = scmp.lt.u32.totalorder %s2314_s10, %s2310_s28  ;;  %p2318_p6 = scmp.lt.u32.totalorder %s2310_s28, %s2710_s13 }
 0x37a   : > { %p2312_p1 = pnand %p2311_p13, %p2779_p0 }
 0x37b   : > { %p2317_p8 = por %p2316_p4, %p2315_p9 }
 0x37c   : > { %p2313_p7 = pneg %p2312_p1 }
 0x37d   : > { %p2319_p2 = por %p2318_p6, %p2317_p8 }
 0x37f   : > { %p2320_p5 = pnand %p2319_p2, %p2313_p7 }
 0x381   : > { %2323 = shalt.err (!%p2320_p5)
}
 0x382   : > { %1990 = dma.vmem_to_hbm [thread:$0]  (%p2779_p0), %s2712_s20, 256, %s2710_s13, %s1623_s30  }
 0x383 PF: > { %s1649_s16 = sand.u32 1, %s2358_s24   ;;  %p2780_p10 = scmp.ne.s32.totalorder %s2772_s15, 0 }
 0x384   : > { %p2781_p11 = scmp.ge.s32.totalorder %s2370_s27, 2  ;;  %s1650_s17 = scalar_lea.sflag [#allocation4], %s1649_s16 }
 0x386   : > { %p2010_p3 = pnand %p2781_p11, %p2780_p10 }
 0x388   : > { %2353 = dma.done.wait (!%p2010_p3), %s1650_s17, 256  }
 0x389   : > { %2355 = vsyncadd (!%p2010_p3), %s1650_s17, 4294967040  ;;  %p22_p12 = scmp.ge.s32.totalorder %s2561_s29, 4   ;;  %s2782_s24 = smov %s2362_s25 }
 0x38a   : > { %s2783_s25 = smov %s2366_s26  ;;  %s2784_s26 = smov %s2572_s9 }
 0x38b   : > { %s2785_s27 = smov %s2561_s29  ;;  %24 = sbr.rel (!%p22_p12) target bundleno = 7 (0x7), region = 109 }
 0x392   :  { %1655 = vsyncpa [#allocation3], 1 }
 0x393   :  { %1657 = vsyncpa [#allocation3 + $0x1], 1 }
 0x394   :  { %1658 = vsyncpa [#allocation6], 1 }
 0x395   :  { %1659 = vsyncpa [#allocation9], 1 }
 0x396   :  { %1660 = vsyncpa [#allocation4], 1 }
 0x397   :  { %1662 = vsyncpa [#allocation4 + $0x1], 1 }

// kernel: tpu_custom_call.1
= control target key start
LH: loop header
LB: loop body
LE: loop exit
PB: predicated region body
PF: predicated region fallthrough
CT: control target
= control target key end

     0   :  { %12 = vsyncpa [#allocation3], 0  ;;  %s2754_s0 = inlined_call_operand.hbm [shape: bf16[16,64], index: 0, kind: input, shape index: {}]   ;;  %s2755_s1 = inlined_call_operand.hbm [shape: bf16[64,1024], index: 1, kind: input, shape index: {}]   ;;  %s2756_s2 = inlined_call_operand.hbm [shape: f32[1,1024], index: 2, kind: input, shape index: {}]   ;;  %s2757_s3 = inlined_call_operand.hbm [shape: bf16[1024,128], index: 3, kind: input, shape index: {}]   ;;  %s2758_s4 = inlined_call_operand.vmem [shape: f32[1,128], index: 4, kind: input, shape index: {}]   ;;  %s2759_s5 = inlined_call_operand.hbm [shape: bf16[128,256], index: 5, kind: input, shape index: {}]   ;;  %s2760_s6 = inlined_call_operand.vmem [shape: f32[1,256], index: 6, kind: input, shape index: {}]   ;;  %s2761_s7 = inlined_call_operand.hbm [shape: f32[16,256], index: 7, kind: output, shape index: {}]  }
   0x1   :  { %14 = vsyncpa [#allocation3 + $0x1], 0 }
   0x2   :  { %15 = vsyncpa [#allocation6], 0 }
   0x3   :  { %16 = vsyncpa [#allocation9], 0 }
   0x4   :  { %17 = vsyncpa [#allocation4], 0 }
   0x5   :  { %19 = vsyncpa [#allocation4 + $0x1], 0  ;;  %s2425_s24 = smov 0   ;;  %s2427_s25 = smov 0  }
   0x6   :  { %s2429_s26 = smov 0   ;;  %s2431_s27 = smov 0  }
   0x7 LB: > { %s2372_s28 = smov [#allocation5]   ;;  %s2446_s30 = sadd.s32 4294967295, %s2370_s27   ;;  %s2370_s27 = sphi %s2431_s27, %s2785_s27   ;;  %s2366_s26 = sphi %s2429_s26, %s2784_s26   ;;  %s2362_s25 = sphi %s2427_s25, %s2783_s25   ;;  %s2358_s24 = sphi %s2425_s24, %s2782_s24  }
   0x8   : > { %s220_s29 = sshll.u32 %s2372_s28, 4  ;;  %p1746_p0 = scmp.ge.s32.totalorder %s2370_s27, 1  ;;  %s2451_s29 = int_to_ptr.vmem [resolvable:$true] %s220_s29 }
   0x9   : > { %p2762_p1 = scmp.eq.s32.totalorder %s2446_s30, 0  ;;  %p208_p2 = scmp.lt.s32.totalorder %s2370_s27, 3 }
   0xa   : > { %s2373_s9 = smov [#allocation8]   ;;  %s2374_s12 = smov [#allocation7]  }
   0xb   : > { %p2453_p3 = pnand %p1746_p0, %p208_p2  ;;  %s244_s10 = sshll.u32 %s2373_s9, 4  ;;  %s2466_s10 = int_to_ptr.vmem [resolvable:$true] %s244_s10 }
   0xc   : > { %s2468_s13 = sshll.u32 %s2374_s12, 4  ;;  %s2154_s16 = scalar_lea.hbm %s2755_s1, 4096  ;;  %s235_s13 = int_to_ptr.vmem [resolvable:$true] %s2468_s13 }
   0xd   : > { %s2765_s8 = scalar_select %p2453_p3, 1, 0 }
   0xe   : > { %p1992_p5 = pneg %p2453_p3  ;;  %p2155_p7 = scmp.ne.s32.totalorder %s2755_s1, %s2154_s16 }
   0xf   : > { %p2161_p11 = scmp.lt.u32.totalorder %s2154_s16, %s2755_s1 }
  0x10   : > { %p2462_p6 = pnand %p1992_p5, %p2762_p1 }
  0x12   : > { %p2478_p8 = pneg %p2462_p6 }
  0x14   : > { %p2157_p9 = pnand %p2478_p8, %p2155_p7 }
  0x16   : > { %p2158_p10 = pneg %p2157_p9 }
  0x18   : > { %p2163_p12 = pnand %p2161_p11, %p2158_p10 }
  0x1a   : > { %2166 = shalt.err (!%p2163_p12)
}
  0x1b   : > { %s2167_s22 = scalar_lea.vmem %s2451_s29, 4096  ;;  %p2175_p5 = scmp.lt.s32.totalorder %s2451_s29, %s2451_s29 }
  0x1c   : > { %p2168_p13 = scmp.ne.s32.totalorder %s2451_s29, %s2167_s22  ;;  %p2176_p4 = scmp.lt.s32.totalorder %s2167_s22, %s2167_s22 }
  0x1e   : > { %p2170_p0 = pnand %p2168_p13, %p2478_p8  ;;  %p2177_p7 = por %p2176_p4, %p2175_p5 }
  0x20   : > { %p2171_p2 = pneg %p2170_p0 }
  0x22   : > { %p2178_p9 = pnand %p2177_p7, %p2171_p2 }
  0x24   : > { %2181 = shalt.err (!%p2178_p9)
}
  0x25   : > { %s2375_s23 = smov 512   ;;  %s2376_s28 = smov 32  }
  0x26   : > { %1995 = dma.hbm_to_vmem [thread:$0]  (!%p2462_p6), %s2755_s1, 4096, %s2451_s29, [#allocation6], %s2375_s23, %s2375_s23, %s2376_s28  }
  0x27   : > { %s2182_s16 = scalar_lea.hbm %s2757_s3, 8192 }
  0x28   : > { %p2183_p4 = scmp.ne.s32.totalorder %s2757_s3, %s2182_s16  ;;  %p2189_p12 = scmp.lt.u32.totalorder %s2182_s16, %s2757_s3 }
  0x2a   : > { %p2185_p10 = pnand %p2183_p4, %p2478_p8 }
  0x2c   : > { %p2186_p11 = pneg %p2185_p10 }
  0x2e   : > { %p2191_p13 = pnand %p2189_p12, %p2186_p11 }
  0x30   : > { %2194 = shalt.err (!%p2191_p13)
}
  0x31   : > { %s2195_s29 = scalar_lea.vmem %s2466_s10, 8192  ;;  %p2203_p7 = scmp.lt.s32.totalorder %s2466_s10, %s2466_s10 }
  0x32   : > { %p2196_p0 = scmp.ne.s32.totalorder %s2466_s10, %s2195_s29  ;;  %p2204_p9 = scmp.lt.s32.totalorder %s2195_s29, %s2195_s29 }
  0x34   : > { %p2198_p2 = pnand %p2196_p0, %p2478_p8  ;;  %p2205_p4 = por %p2204_p9, %p2203_p7 }
  0x36   : > { %p2199_p5 = pneg %p2198_p2 }
  0x38   : > { %p2206_p10 = pnand %p2205_p4, %p2199_p5 }
  0x3a   : > { %2209 = shalt.err (!%p2206_p10)
}
  0x3b   : > { %s2377_s22 = smov 64   ;;  %s2378_s23 = smov 4  }
  0x3c   : > { %2001 = dma.hbm_to_vmem [thread:$0]  (!%p2462_p6), %s2757_s3, 8192, %s2466_s10, [#allocation9], %s2377_s22, %s2377_s22, %s2378_s23  }
  0x3d   : > { %s2210_s15 = scalar_lea.hbm %s2756_s2, 128 }
  0x3e   : > { %p2211_p11 = scmp.ne.s32.totalorder %s2756_s2, %s2210_s15  ;;  %p2217_p0 = scmp.lt.u32.totalorder %s2210_s15, %s2756_s2 }
  0x40   : > { %p2213_p12 = pnand %p2211_p11, %p2478_p8 }
  0x42   : > { %p2214_p13 = pneg %p2213_p12 }
  0x44   : > { %p2219_p2 = pnand %p2217_p0, %p2214_p13 }
  0x46   : > { %2222 = shalt.err (!%p2219_p2)
}
  0x47   : > { %s2223_s21 = scalar_lea.vmem %s235_s13, 128  ;;  %p2231_p4 = scmp.lt.s32.totalorder %s235_s13, %s235_s13 }
  0x48   : > { %p2224_p5 = scmp.ne.s32.totalorder %s235_s13, %s2223_s21  ;;  %p2232_p10 = scmp.lt.s32.totalorder %s2223_s21, %s2223_s21 }
  0x4a   : > { %p2226_p7 = pnand %p2224_p5, %p2478_p8  ;;  %p2233_p1 = por %p2232_p10, %p2231_p4 }
  0x4c   : > { %p2227_p9 = pneg %p2226_p7 }
  0x4e   : > { %p2234_p3 = pnand %p2233_p1, %p2227_p9 }
  0x50   : > { %2237 = shalt.err (!%p2234_p3)
}
  0x51   : > { %1998 = dma.hbm_to_vmem [thread:$0]  (!%p2462_p6), %s2756_s2, 128, %s235_s13, [#allocation6]  }
  0x52   : > { %s2379_s22 = smov [#allocation10]   ;;  %s2238_s12 = scalar_lea.hbm %s2759_s5, 2048 }
  0x53   : > { %s260_s23 = sshll.u32 %s2379_s22, 4  ;;  %p2239_p11 = scmp.ne.s32.totalorder %s2759_s5, %s2238_s12  ;;  %s261_s23 = int_to_ptr.vmem [resolvable:$true] %s260_s23 }
  0x54   : > { %p2245_p12 = scmp.lt.u32.totalorder %s2238_s12, %s2759_s5 }
  0x55   : > { %p2241_p1 = pnand %p2239_p11, %p2478_p8 }
  0x57   : > { %p2242_p3 = pneg %p2241_p1 }
  0x59   : > { %p2247_p13 = pnand %p2245_p12, %p2242_p3 }
  0x5b   : > { %2250 = shalt.err (!%p2247_p13)
}
  0x5c   : > { %s2251_s13 = scalar_lea.vmem %s261_s23, 2048  ;;  %p2259_p7 = scmp.lt.s32.totalorder %s261_s23, %s261_s23 }
  0x5d   : > { %p2252_p0 = scmp.ne.s32.totalorder %s261_s23, %s2251_s13  ;;  %p2260_p9 = scmp.lt.s32.totalorder %s2251_s13, %s2251_s13 }
  0x5f   : > { %p2254_p2 = pnand %p2252_p0, %p2478_p8  ;;  %p2261_p4 = por %p2260_p9, %p2259_p7 }
  0x61   : > { %p2255_p5 = pneg %p2254_p2 }
  0x63   : > { %p2262_p10 = pnand %p2261_p4, %p2255_p5 }
  0x65   : > { %2265 = shalt.err (!%p2262_p10)
}
  0x66   : > { %s2380_s18 = smov 128   ;;  %s2381_s19 = smov 8  }
  0x67   : > { %2004 = dma.hbm_to_vmem [thread:$0]  (!%p2462_p6), %s2759_s5, 2048, %s261_s23, [#allocation9], %s2380_s18, %s2380_s18, %s2381_s19  }
  0x68   : > { %s1745_s10 = sadd.s32 4294967294, %s2370_s27   ;;  %s2561_s29 = sadd.s32 1, %s2370_s27  }
  0x69   : > { %s29_s22 = ssub.s32 %s2370_s27, %s2561_s29  ;;  %s32_s28 = sadd.s32 1, %s2366_s26 }
  0x6a   : > { %p30_p8 = scmp.eq.s32.totalorder %s29_s22, 0  ;;  %p39_p11 = scmp.ne.s32.totalorder %s2366_s26, %s2362_s25 }
  0x6b   : > { %p40_p1 = scmp.eq.s32.totalorder %s2370_s27, 0  ;;  %p45_p3 = scmp.ne.s32.totalorder %s2362_s25, %s2358_s24 }
  0x6c   : > { %s2572_s9 = scalar_select %p30_p8, %s2366_s26, %s32_s28  }
  0x6d   : > { %p2574_p12 = por %p40_p1, %p39_p11  ;;  %p2769_p13 = scmp.eq.s32.totalorder %s2446_s30, 0 }
  0x6e   : > { %p195_p0 = scmp.eq.s32.totalorder %s2446_s30, 1  ;;  %p201_p2 = scmp.eq.s32.totalorder %s1745_s10, 1 }
  0x6f   : > { %p2580_p6 = por %p2769_p13, %p45_p3  ;;  %p2017_p5 = scmp.lt.s32.totalorder %s2370_s27, 2 }
  0x70   : > { %s277_s12 = sand.u32 1, %s2366_s26   ;;  %p2587_p7 = por %p195_p0, %p39_p11 }
  0x71   : > { %p2591_p9 = por %p201_p2, %p45_p3  ;;  %s1752_s16 = sshll.u32 %s277_s12, 2 }
  0x72   : > { %s2771_s14 = scalar_select %p2587_p7, 1, 0 }
  0x73   : > { %s2772_s15 = scalar_select %p2591_p9, 1, 0 }
  0x74   : > { %s1753_s17 = sshll.u32 %s2370_s27, 6  ;;  %s281_s20 = scalar_lea.vmem [#allocation2], %s1752_s16 }
  0x75   : > { %s2599_s19 = scalar_lea.hbm %s2754_s0, %s1753_s17  ;;  %s288_s21 = sshll.u32 %s281_s20, 4  ;;  %s2601_s21 = int_to_ptr.vmem [resolvable:$true] %s288_s21 }
  0x76   : > { %p2605_p4 = pnand %p2017_p5, %p2574_p12  ;;  %s278_s22 = scalar_lea.sflag [#allocation3], %s277_s12 }
  0x77   : > { %s2266_s28 = scalar_lea.hbm %s2599_s19, 64  ;;  %s2271_s13 = scalar_lea.hbm %s2754_s0, 128 }
  0x78   : > { %p2267_p10 = scmp.ne.s32.totalorder %s2599_s19, %s2266_s28  ;;  %p2268_p8 = pneg %p2605_p4 }
  0x79   : > { %p2272_p3 = scmp.lt.u32.totalorder %s2599_s19, %s2754_s0  ;;  %p2273_p12 = scmp.lt.u32.totalorder %s2271_s13, %s2266_s28 }
  0x7a   : > { %p2269_p11 = pnand %p2268_p8, %p2267_p10  ;;  %p2275_p0 = scmp.lt.u32.totalorder %s2266_s28, %s2599_s19 }
  0x7b   : > { %p2274_p13 = por %p2273_p12, %p2272_p3 }
  0x7c   : > { %p2270_p1 = pneg %p2269_p11 }
  0x7d   : > { %p2276_p2 = por %p2275_p0, %p2274_p13 }
  0x7f   : > { %p2277_p5 = pnand %p2276_p2, %p2270_p1 }
  0x81   : > { %2280 = shalt.err (!%p2277_p5)
}
  0x82   : > { %s2281_s12 = scalar_lea.vmem %s2601_s21, 64  ;;  %s2382_s20 = smov [#allocation2]  }
  0x83   : > { %p2282_p10 = scmp.ne.s32.totalorder %s2601_s21, %s2281_s12  ;;  %s2286_s16 = sshll.u32 %s2382_s20, 4  ;;  %s2287_s16 = int_to_ptr.vmem [resolvable:$false] %s2286_s16 }
  0x84   : > { %s2288_s17 = scalar_lea.vmem %s2287_s16, 128  ;;  %p2289_p7 = scmp.lt.s32.totalorder %s2601_s21, %s2287_s16 }
  0x85   : > { %p2284_p11 = pnand %p2282_p10, %p2268_p8  ;;  %p2290_p3 = scmp.lt.s32.totalorder %s2288_s17, %s2281_s12 }
  0x87   : > { %p2285_p9 = pneg %p2284_p11  ;;  %p2291_p12 = por %p2290_p3, %p2289_p7 }
  0x89   : > { %p2292_p13 = pnand %p2291_p12, %p2285_p9 }
  0x8b   : > { %2295 = shalt.err (!%p2292_p13)
}
  0x8c   : > { %2008 = dma.hbm_to_vmem [thread:$0]  (!%p2605_p4), %s2599_s19, 64, %s2601_s21, %s278_s22  }
  0x8d   : > { %p2774_p1 = scmp.ne.s32.totalorder %s2765_s8, 0 }
  0x8e   : > { %s2637_s28 = sand.u32 (!%p2774_p1), 1, %s2362_s25  }
  0x8f   : > { %297 = sbr.rel (%p2774_p1) target bundleno = 899 (0x383), region = 48  ;;  %s1755_s13 = sshll.u32 (!%p2774_p1), %s2637_s28, 2 }
  0x90   : > { %s300_s11 = scalar_lea.sflag (!%p2774_p1), [#allocation3], %s2637_s28  ;;  %s2641_s18 = scalar_lea.vmem (!%p2774_p1), [#allocation2], %s1755_s13 }
  0x96   : > { %2341 = dma.done.wait (%p2580_p6), %s300_s11, 64  }
  0x97   : > { %2343 = vsyncadd (%p2580_p6), %s300_s11, 4294967232  ;;  %p2775_p7 = scmp.eq.s32.totalorder %s2446_s30, 0 }
  0x99   : > { %2345 = dma.done.wait (%p2775_p7), [#allocation6], 4224   ;;  %p2776_p9 = pmov %p2775_p7 }
  0x9a   : > { %p2777_p4 = pmov %p2775_p7 }
  0x9b   : > { %2347 = vsyncadd (%p2776_p9), [#allocation6], 4294963072 }
  0x9c   : > { %2349 = dma.done.wait (%p2777_p4), [#allocation9], 10240   ;;  %p2778_p8 = pmov %p2777_p4 }
  0x9d   : > { %v2383_v0 = vmov 0   ;;  %v352_v1 = vld [vmem:[#allocation5] sm:$0xff]  ;;  %v354_v14 = vld [vmem:[#allocation5 + $0x10] sm:$0xff]  ;;  %v353_v25 = vld [vmem:[#allocation5 + $0x8] sm:$0xff]  ;;  %vm586_vm0 = vcmask 523264   ;;  %s1760_s10 = sshll.u32 %s2637_s28, 4 }
  0x9e   : > { %2351 = vsyncadd (%p2778_p8), [#allocation9], 4294957056  ;;  %622 = vmatprep.mubr.bf16.mxu1 %v2383_v0  ;;  %704 = vmatprep.mubr.bf16.mxu0 %v2383_v0  ;;  %v356_v2 = vld [vmem:[#allocation5 + $0x20] sm:$0xff]  ;;  %v358_v15 = vld [vmem:[#allocation5 + $0x30] sm:$0xff]  ;;  %s1883_s22 = sshll.u32 %s2446_s30, 8  ;;  %s349_s12 = scalar_lea.vmem [#allocation11], %s1760_s10 }
  0x9f   : > { %v360_v3 = vld [vmem:[#allocation5 + $0x40] sm:$0xff]  ;;  %v1762_v4 = vcombine.high %v352_v1, %v356_v2  ;;  %v1761_v5 = vcombine.low %v352_v1, %v356_v2  ;;  %v362_v16 = vld [vmem:[#allocation5 + $0x50] sm:$0xff]  ;;  %v1766_v18 = vcombine.high %v354_v14, %v358_v15  ;;  %v1765_v19 = vcombine.low %v354_v14, %v358_v15  ;;  %v357_v26 = vld [vmem:[#allocation5 + $0x28] sm:$0xff]  ;;  %s1637_s20 = sshll.u32 %s349_s12, 4  ;;  %s2710_s13 = scalar_lea.hbm %s2761_s7, %s1883_s22  ;;  %s2712_s20 = int_to_ptr.vmem [resolvable:$true] %s1637_s20 }
  0xa0   : > { %v364_v6 = vld [vmem:[#allocation5 + $0x60] sm:$0xff]  ;;  %v366_v17 = vld [vmem:[#allocation5 + $0x70] sm:$0xff]  ;;  %v1764_v32 = vcombine.high %v353_v25, %v357_v26  ;;  %v361_v33 = vld [vmem:[#allocation5 + $0x48] sm:$0xff]  ;;  %v1763_v38 = vcombine.low %v353_v25, %v357_v26  ;;  %s1623_s30 = scalar_lea.sflag [#allocation4], %s2637_s28  ;;  %s2296_s11 = scalar_lea.vmem %s2712_s20, 256 }
  0xa1   : > { %v1770_v7 = vcombine.high %v360_v3, %v364_v6  ;;  %v368_v8 = vld [vmem:[#allocation5 + $0x80] sm:$0xff]  ;;  %590 = vmatprep.subr.bf16.mxu1 %v1762_v4  ;;  %v1769_v10 = vcombine.low %v360_v3, %v364_v6  ;;  %v1774_v20 = vcombine.high %v362_v16, %v366_v17  ;;  %v370_v22 = vld [vmem:[#allocation5 + $0x90] sm:$0xff]  ;;  %672 = vmatprep.subr.bf16.mxu0 %v1766_v18  ;;  %v365_v34 = vld [vmem:[#allocation5 + $0x68] sm:$0xff]  ;;  %p2297_p6 = scmp.ne.s32.totalorder %s2712_s20, %s2296_s11  ;;  %p2779_p0 = scmp.ne.s32.totalorder %s2771_s14, 0 }
  0xa2   : > { %v372_v9 = vld [vmem:[#allocation5 + $0xa0] sm:$0xff]  ;;  %591 = vmatpush1.bf16.msra.mxu1 %v1761_v5  ;;  %v374_v23 = vld [vmem:[#allocation5 + $0xb0] sm:$0xff]  ;;  %673 = vmatpush1.bf16.msra.mxu0 %v1765_v19  ;;  %v1773_v27 = vcombine.low %v362_v16, %v366_v17  ;;  %v2658_v37 = vld [vmem:[%s2641_s18] sm:$0xf]  ;;  %v1772_v39 = vcombine.high %v361_v33, %v365_v34  ;;  %v1771_v44 = vcombine.low %v361_v33, %v365_v34  ;;  %s2384_s18 = smov [#allocation11]  }
  0xa3   : > { %592 = vmatprep.subr.bf16.mxu1 %v1770_v7  ;;  %v1778_v11 = vcombine.high %v368_v8, %v372_v9  ;;  %v376_v12 = vld [vmem:[#allocation5 + $0xc0] sm:$0xff]  ;;  %v1777_v21 = vcombine.low %v368_v8, %v372_v9  ;;  %674 = vmatprep.subr.bf16.mxu0 %v1774_v20  ;;  %v1782_v28 = vcombine.high %v370_v22, %v374_v23  ;;  %v378_v29 = vld [vmem:[#allocation5 + $0xd0] sm:$0xff]  ;;  %v369_v40 = vld [vmem:[#allocation5 + $0x88] sm:$0xff]  ;;  %p2298_p2 = pnand %p2297_p6, %p2779_p0  ;;  %s2300_s8 = sshll.u32 %s2384_s18, 4  ;;  %s2301_s8 = int_to_ptr.vmem [resolvable:$false] %s2300_s8 }
  0xa4   : > { %v380_v13 = vld [vmem:[#allocation5 + $0xe0] sm:$0xff]  ;;  %v382_v31 = vld [vmem:[#allocation5 + $0xf0] sm:$0xff]  ;;  %v1781_v35 = vcombine.low %v370_v22, %v374_v23  ;;  %v373_v41 = vld [vmem:[#allocation5 + $0xa8] sm:$0xff]  ;;  %s2302_s23 = scalar_lea.vmem %s2301_s8, 512  ;;  %p2303_p10 = scmp.lt.s32.totalorder %s2712_s20, %s2301_s8 }
  0xa5   : > { %v1786_v24 = vcombine.high %v376_v12, %v380_v13  ;;  %v1785_v30 = vcombine.low %v376_v12, %v380_v13  ;;  %v1790_v36 = vcombine.high %v378_v29, %v382_v31  ;;  %v1789_v42 = vcombine.low %v378_v29, %v382_v31  ;;  %v2066_v43 = vld [vmem:[#allocation8 + $0x40] sm:$0xff]   ;;  %v2068_v49 = vld [vmem:[#allocation8 + $0x48] sm:$0xff]   ;;  %v355_v51 = vld [vmem:[#allocation5 + $0x18] sm:$0xff]  ;;  %p2299_p5 = pneg %p2298_p2  ;;  %p2304_p11 = scmp.lt.s32.totalorder %s2302_s23, %s2296_s11 }
  0xa6   : > { %593 = vmatpush1.bf16.msra.mxu1 %v1769_v10  ;;  %675 = vmatpush1.bf16.msra.mxu0 %v1773_v27  ;;  %v377_v45 = vld [vmem:[#allocation5 + $0xc8] sm:$0xff]  ;;  %v1780_v46 = vcombine.high %v369_v40, %v373_v41  ;;  %v1779_v50 = vcombine.low %v369_v40, %v373_v41  ;;  %v359_v53 = vld [vmem:[#allocation5 + $0x38] sm:$0xff]  ;;  %v2069_v54 = vld [vmem:[#allocation8 + $0x8] sm:$0xff]  }
  0xa7   : > { %594 = vmatprep.subr.bf16.mxu1 %v1778_v11  ;;  %676 = vmatprep.subr.bf16.mxu0 %v1782_v28  ;;  %v381_v47 = vld [vmem:[#allocation5 + $0xe8] sm:$0xff]  ;;  %v2070_v55 = vld [vmem:[#allocation8 + $0x50] sm:$0xff]   ;;  %v1768_v60 = vcombine.high %v355_v51, %v359_v53  ;;  %v2072_v61 = vld [vmem:[#allocation8 + $0x58] sm:$0xff]   ;;  %v1767_v62 = vcombine.low %v355_v51, %v359_v53  ;;  %p2305_p3 = por %p2304_p11, %p2303_p10 }
  0xa8   : > { %v2067_v48 = vld [vmem:[#allocation8] sm:$0xff]   ;;  %v1788_v52 = vcombine.high %v377_v45, %v381_v47  ;;  %v1787_v56 = vcombine.low %v377_v45, %v381_v47  ;;  %v363_v57 = vld [vmem:[#allocation5 + $0x58] sm:$0xff]  ;;  %v2073_v2 = vld [vmem:[#allocation8 + $0x18] sm:$0xff]  }
  0xa9   : > { %v367_v58 = vld [vmem:[#allocation5 + $0x78] sm:$0xff]  ;;  %v2074_v4 = vld [vmem:[#allocation8 + $0x60] sm:$0xff]   ;;  %v2078_v10 = vld [vmem:[#allocation8 + $0x68] sm:$0xff]   ;;  %p2306_p12 = pnand %p2305_p3, %p2299_p5 }
  0xaa   : > { %595 = vmatpush1.bf16.msra.mxu1 %v1777_v21  ;;  %677 = vmatpush1.bf16.msra.mxu0 %v1781_v35  ;;  %v2071_v59 = vld [vmem:[#allocation8 + $0x10] sm:$0xff]   ;;  %v1776_v3 = vcombine.high %v363_v57, %v367_v58  ;;  %v1775_v5 = vcombine.low %v363_v57, %v367_v58  ;;  %v2076_v8 = vld [vmem:[#allocation8 + $0x20] sm:$0xff]   ;;  %v2080_v12 = vld [vmem:[#allocation8 + $0x28] sm:$0xff]  }
  0xab   : > { %596 = vmatprep.subr.bf16.mxu1 %v1786_v24  ;;  %678 = vmatprep.subr.bf16.mxu0 %v1790_v36  ;;  %v371_v63 = vld [vmem:[#allocation5 + $0x98] sm:$0xff]  ;;  %v2075_v14 = vld [vmem:[#allocation8 + $0xc0] sm:$0xff]   ;;  %v2079_v17 = vld [vmem:[#allocation8 + $0xc8] sm:$0xff]  }
  0xac   : > { %v375_v1 = vld [vmem:[#allocation5 + $0xb8] sm:$0xff]  ;;  %v2077_v16 = vld [vmem:[#allocation8 + $0x80] sm:$0xff]   ;;  %v2081_v18 = vld [vmem:[#allocation8 + $0x88] sm:$0xff]  }
  0xad   : > { %v379_v6 = vld [vmem:[#allocation5 + $0xd8] sm:$0xff]  ;;  %v1784_v9 = vcombine.high %v371_v63, %v375_v1  ;;  %v1783_v11 = vcombine.low %v371_v63, %v375_v1  ;;  %v2086_v23 = vld [vmem:[#allocation8 + $0x78] sm:$0xff]   ;;  %v2090_v27 = vld [vmem:[#allocation8 + $0xe0] sm:$0xff]  }
  0xae   : > { %597 = vmatpush1.bf16.msra.mxu1 %v1785_v30  ;;  %679 = vmatpush1.bf16.msra.mxu0 %v1789_v42  ;;  %v383_v7 = vld [vmem:[#allocation5 + $0xf8] sm:$0xff]  ;;  %v2087_v24 = vld [vmem:[#allocation8 + $0xd8] sm:$0xff]   ;;  %v2091_v28 = vld [vmem:[#allocation8 + $0x140] sm:$0xff]  }
  0xaf   : > { %631 = vmatprep.subr.bf16.mxu1 %v1764_v32  ;;  %1884 = vmatprep.subr.bf16.mxu0 %v2066_v43  ;;  %v1792_v13 = vcombine.high %v379_v6, %v383_v7  ;;  %v1791_v15 = vcombine.low %v379_v6, %v383_v7  ;;  %v2082_v19 = vld [vmem:[#allocation8 + $0x70] sm:$0xff]   ;;  %v2088_v25 = vld [vmem:[#allocation8 + $0x38] sm:$0xff]   ;;  %v2092_v29 = vld [vmem:[#allocation8 + $0xa0] sm:$0xff]  }
  0xb0   : > { %v2083_v20 = vld [vmem:[#allocation8 + $0xd0] sm:$0xff]   ;;  %v2089_v26 = vld [vmem:[#allocation8 + $0x98] sm:$0xff]   ;;  %v2094_v30 = vld [vmem:[#allocation8 + $0xe8] sm:$0xff]  }
  0xb1   : > { %1793 = vmatmul.mubr.msk.bf16.vlgmr.msra.gmra.mrb[0].mxu1 %vm586_vm0, %v2658_v37  ;;  %1795 = vmatmul.mubr.msk.bf16.vlgmr.msra.gmra.mrb[0].mxu0 %vm586_vm0, %v2658_v37  ;;  %v2084_v21 = vld [vmem:[#allocation8 + $0x30] sm:$0xff]   ;;  %v2096_v31 = vld [vmem:[#allocation8 + $0xa8] sm:$0xff]   ;;  %v2102_v34 = vld [vmem:[#allocation8 + $0xf8] sm:$0xff]  }
  0xb2   : > { %632 = vmatpush1.bf16.msra.mxu1 %v1763_v38  ;;  %663 = vmatprep.mubr.bf16.mxu1 %v2383_v0  ;;  %v2085_v22 = vld [vmem:[#allocation8 + $0x90] sm:$0xff]   ;;  %v2104_v35 = vld [vmem:[#allocation8 + $0xb8] sm:$0xff]   ;;  %v2107_v36 = vld [vmem:[#allocation8 + $0x1c0] sm:$0xff]  }
  0xb3   : > { %633 = vmatprep.subr.bf16.mxu1 %v1772_v39  ;;  %1885 = vmatpush3.bf16.msra.mxu0 %v2067_v48  ;;  %v2098_v32 = vld [vmem:[#allocation8 + $0xf0] sm:$0xff]   ;;  %v2673_v40 = vld [vmem:[#allocation7] sm:$0xff]  ;;  %v2093_v58 = vld [vmem:[#allocation8 + $0x100] sm:$0xff]  }
  0xb4   : > { %1886 = vmatprep.subr.bf16.mxu0 %v2068_v49  ;;  %v2100_v33 = vld [vmem:[#allocation8 + $0xb0] sm:$0xff]  }
  0xb5   : > { %v2099_v6 = vld [vmem:[#allocation8 + $0x150] sm:$0xff]  }
  0xb6   : > { %634 = vmatpush1.bf16.msra.mxu1 %v1771_v44 }
  0xb7   : > { %635 = vmatprep.subr.bf16.mxu1 %v1780_v46  ;;  %1887 = vmatpush3.bf16.msra.mxu0 %v2069_v54 }
  0xb8   : > { %1888 = vmatprep.subr.bf16.mxu0 %v2070_v55 }
  0xba   : > { %636 = vmatpush1.bf16.msra.mxu1 %v1779_v50 }
  0xbb   : > { %637 = vmatprep.subr.bf16.mxu1 %v1788_v52  ;;  %1889 = vmatpush3.bf16.msra.mxu0 %v2071_v59 }
  0xbc   : > { %1890 = vmatprep.subr.bf16.mxu0 %v2072_v61  ;;  %v2095_v61 = vld [vmem:[#allocation8 + $0x148] sm:$0xff]  }
  0xbe   : > { %638 = vmatpush1.bf16.msra.mxu1 %v1787_v56 }
  0xbf   : > { %713 = vmatprep.subr.bf16.mxu1 %v1768_v60  ;;  %1891 = vmatpush3.bf16.msra.mxu0 %v2073_v2 }
  0xc0   : > { %1892 = vmatprep.subr.bf16.mxu0 %v2074_v4 }
  0xc1   : > { %1794 = vmatmul.mubr.msk.bf16.vlgmr.msra.gmra.mrb[4].mxu1 %vm586_vm0, %v2658_v37 }
  0xc2   : > { %714 = vmatpush1.bf16.msra.mxu1 %v1767_v62  ;;  %745 = vmatprep.mubr.bf16.mxu1 %v2383_v0 }
  0xc3   : > { %715 = vmatprep.subr.bf16.mxu1 %v1776_v3  ;;  %1893 = vmatpush3.bf16.msra.mxu0 %v2076_v8 }
  0xc4   : > { %1894 = vmatprep.subr.bf16.mxu0 %v2078_v10 }
  0xc6   : > { %716 = vmatpush1.bf16.msra.mxu1 %v1775_v5  ;;  %v2097_v5 = vld [vmem:[#allocation8 + $0x108] sm:$0xff]  }
  0xc7   : > { %717 = vmatprep.subr.bf16.mxu1 %v1784_v9  ;;  %1895 = vmatpush3.bf16.msra.mxu0 %v2080_v12 }
  0xc8   : > { %1896 = vmatprep.subr.bf16.mxu0 %v2082_v19 }
  0xca   : > { %718 = vmatpush1.bf16.msra.mxu1 %v1783_v11  ;;  %v2101_v11 = vld [vmem:[#allocation8 + $0x110] sm:$0xff]  }
  0xcb   : > { %719 = vmatprep.subr.bf16.mxu1 %v1792_v13  ;;  %1897 = vmatpush3.bf16.msra.mxu0 %v2084_v21  ;;  %v2103_v13 = vld [vmem:[#allocation8 + $0x158] sm:$0xff]  }
  0xcc   : > { %1898 = vmatprep.subr.bf16.mxu0 %v2086_v23  ;;  %v2106_v23 = vld [vmem:[#allocation8 + $0x160] sm:$0xff]  }
  0xce   : > { %720 = vmatpush1.bf16.msra.mxu1 %v1791_v15 }
  0xcf   : > { %1906 = vmatprep.subr.bf16.mxu1 %v2075_v14  ;;  %1899 = vmatpush3.bf16.msra.mxu0 %v2088_v25 }
  0xd0   : > { %1928 = vmatprep.subr.bf16.mxu0 %v2091_v28  ;;  %v2109_v28 = vld [vmem:[#allocation8 + $0x180] sm:$0xff]  }
  0xd1   : > { %1796 = vmatmul.mubr.msk.bf16.vlgmr.msra.gmra.mrb[8].mxu1 %vm586_vm0, %v2658_v37  ;;  %v386_v37 = vlaneseq }
  0xd2   : > { %1907 = vmatpush3.bf16.msra.mxu1 %v2077_v16 }
  0xd3   : > { %1908 = vmatprep.subr.bf16.mxu1 %v2079_v17  ;;  %v2670_v38 = vshrl.u32 %v386_v37, 7  ;;  %v2114_v37 = vld [vmem:[#allocation8 + $0x170] sm:$0xff]  }
  0xd5   : > { %v388_v39 = vsub.s32 0, %v2670_v38  ;;  %v392_v41 = vsub.s32 1, %v2670_v38  ;;  %v408_v45 = vsub.s32 5, %v2670_v38  ;;  %v396_v1 = vsub.s32 2, %v2670_v38 }
  0xd6   : > { %1909 = vmatpush3.bf16.msra.mxu1 %v2081_v18  ;;  %v400_v3 = vsub.s32 3, %v2670_v38  ;;  %v404_v21 = vsub.s32 4, %v2670_v38 }
  0xd7   : > { %1910 = vmatprep.subr.bf16.mxu1 %v2083_v20  ;;  %v389_v42 = vrot.slane %v2673_v40, %v388_v39  ;;  %v393_v43 = vrot.slane %v2673_v40, %v392_v41  ;;  %v409_v53 = vrot.slane %v2673_v40, %v408_v45  ;;  %v397_v8 = vrot.slane %v2673_v40, %v396_v1  ;;  %v2105_v20 = vld [vmem:[#allocation8 + $0x118] sm:$0xff]   ;;  %v2116_v45 = vld [vmem:[#allocation8 + $0x130] sm:$0xff]   ;;  %v2124_v1 = vld [vmem:[#allocation8 + $0x1e8] sm:$0xff]  }
  0xd8   : > { %v401_v10 = vrot.slane %v2673_v40, %v400_v3  ;;  %v2125_v3 = vld [vmem:[#allocation8 + $0x1a8] sm:$0xff]  }
  0xda   : > { %1911 = vmatpush3.bf16.msra.mxu1 %v2085_v22 }
  0xdb   : > { %1912 = vmatprep.subr.bf16.mxu1 %v2087_v24 }
  0xde   : > { %1913 = vmatpush3.bf16.msra.mxu1 %v2089_v26 }
  0xdf   : > { %1914 = vmatprep.subr.bf16.mxu1 %v2090_v27  ;;  %v2108_v27 = vld [vmem:[#allocation8 + $0x120] sm:$0xff]  }
  0xe2   : > { %1915 = vmatpush3.bf16.msra.mxu1 %v2092_v29  ;;  %v405_v29 = vrot.slane %v2673_v40, %v404_v21  ;;  %v2145_v21 = vld [vmem:[#allocation10 + $0x50] ss:$8 sps:$4 sm:$0xff]  }
  0xe3   : > { %1916 = vmatprep.subr.bf16.mxu1 %v2094_v30 }
  0xe6   : > { %1917 = vmatpush3.bf16.msra.mxu1 %v2096_v31  ;;  %v2110_v31 = vld [vmem:[#allocation8 + $0x168] sm:$0xff]  }
  0xe7   : > { %1918 = vmatprep.subr.bf16.mxu1 %v2098_v32  ;;  %v2111_v32 = vld [vmem:[#allocation8 + $0x1c8] sm:$0xff]  }
  0xea   : > { %1919 = vmatpush3.bf16.msra.mxu1 %v2100_v33  ;;  %v416_v33 = vsub.s32 7, %v2670_v38 }
  0xeb   : > { %1920 = vmatprep.subr.bf16.mxu1 %v2102_v34  ;;  %v2112_v34 = vld [vmem:[#allocation8 + $0x128] sm:$0xff]  }
  0xee   : > { %1921 = vmatpush3.bf16.msra.mxu1 %v2104_v35  ;;  %v2113_v35 = vld [vmem:[#allocation8 + $0x188] sm:$0xff]  }
  0xef   : > { %1950 = vmatprep.subr.bf16.mxu1 %v2107_v36 }
 0x184   : > { %v624_v44 = vpop.f32.mrb[0].mxu1  ;;  %v706_v56 = vpop.f32.mrb[0].mxu0 }
 0x185   : > { %v625_v46 = vadd.f32 %v624_v44, %v389_v42  ;;  %v626_v47 = vpop.f32.mrb[1].mxu1  ;;  %v708_v59 = vpop.f32.mrb[1].mxu0  ;;  %v707_v36 = vadd.f32 %v706_v56, %v405_v29  ;;  %v2115_v42 = vld [vmem:[#allocation8 + $0x1d0] sm:$0xff]  }
 0x186   : > { %v627_v48 = vadd.f32 %v626_v47, %v393_v43  ;;  %v628_v49 = vpop.f32.mrb[2].mxu1  ;;  %v709_v62 = vadd.f32 %v708_v59, %v409_v53  ;;  %v710_v63 = vpop.f32.mrb[2].mxu0  ;;  %v417_v43 = vrot.slane %v2673_v40, %v416_v33  ;;  %v2118_v47 = vld [vmem:[#allocation8 + $0x178] sm:$0xff]   ;;  %v412_v59 = vsub.s32 6, %v2670_v38 }
 0x187   : > { %vm754_vm1 = vcmp.gt.f32.partialorder %v625_v46, 0.0  ;;  %v762_v50 = vmul.f32 0.2, %v625_v46  ;;  %v629_v51 = vpop.f32.mrb[3].mxu1  ;;  %v711_v2 = vpop.f32.mrb[3].mxu0  ;;  %vm758_vm6 = vcmp.gt.f32.partialorder %v707_v36, 0.0 }
 0x188   : > { %vm755_vm2 = vcmp.gt.f32.partialorder %v627_v48, 0.0  ;;  %v763_v52 = vmul.f32 0.2, %v627_v48  ;;  %vm759_vm3 = vcmp.gt.f32.partialorder %v709_v62, 0.0  ;;  %v767_v4 = vmul.f32 0.2, %v709_v62 }
 0x189   : > { %v770_v54 = vsel %vm754_vm1, %v625_v46, %v762_v50  ;;  %v766_v44 = vmul.f32 0.2, %v707_v36  ;;  %v2117_v46 = vld [vmem:[#allocation8 + $0x190] sm:$0xff]   ;;  %v413_v2 = vrot.slane %v2673_v40, %v412_v59 }
 0x18a   : > { %v771_v55 = vsel %vm755_vm2, %v627_v48, %v763_v52  ;;  %v778_v60 = vpack.c.bf16 %v770_v54, %v770_v54  ;;  %v775_v7 = vsel %vm759_vm3, %v709_v62, %v767_v4  ;;  %v2119_v48 = vld [vmem:[#allocation8 + $0x1d8] sm:$0xff]   ;;  %v2123_v62 = vld [vmem:[#allocation8 + $0x1a0] sm:$0xff]   ;;  %v2126_v4 = vld [vmem:[#allocation8 + $0x1f0] sm:$0xff]  }
 0x18b   : > { %v779_v57 = vpack.c.bf16 %v771_v55, %v771_v55  ;;  %v783_v9 = vpack.c.bf16 %v775_v7, %v775_v7  ;;  %v774_v53 = vsel %vm758_vm6, %v707_v36, %v766_v44  ;;  %v2120_v54 = vld [vmem:[#allocation8 + $0x138] sm:$0xff]  }
 0x18c   : > { %v2121_v55 = vld [vmem:[#allocation8 + $0x198] sm:$0xff]  }
 0x18d   : > { %1337 = vmatprep.mubr.bf16.mxu0 %v779_v57  ;;  %v2122_v57 = vld [vmem:[#allocation8 + $0x1e0] sm:$0xff]   ;;  %v2128_v7 = vld [vmem:[#allocation8 + $0x1f8] sm:$0xff]  }
 0x18e   : > { %1338 = vmatmul.mubr.bf16.vlgmr.msra.gmra.mrb[4].mxu0 %v778_v60  ;;  %v782_v60 = vpack.c.bf16 %v774_v53, %v774_v53 }
 0x18f   : > { %1929 = vmatpush3.bf16.msra.mxu0 %v2093_v58  ;;  %1417 = vmatprep.mubr.bf16.mxu0 %v783_v9  ;;  %v2129_v9 = vld [vmem:[#allocation8 + $0x1b8] sm:$0xff]  }
 0x190   : > { %1930 = vmatprep.subr.bf16.mxu0 %v2095_v61 }
 0x193   : > { %1931 = vmatpush3.bf16.msra.mxu0 %v2097_v5 }
 0x194   : > { %v665_v12 = vpop.f32.mrb[4].mxu1  ;;  %1932 = vmatprep.subr.bf16.mxu0 %v2099_v6  ;;  %v2127_v6 = vld [vmem:[#allocation8 + $0x1b0] sm:$0xff]  }
 0x195   : > { %v666_v14 = vadd.f32 %v665_v12, %v397_v8  ;;  %v667_v15 = vpop.f32.mrb[5].mxu1  ;;  %v2132_v12 = vld [vmem:[#allocation10 + $0x4] ss:$8 sps:$4 sm:$0xff]  }
 0x196   : > { %v668_v16 = vadd.f32 %v667_v15, %v401_v10  ;;  %v669_v17 = vpop.f32.mrb[6].mxu1  ;;  %v2136_v15 = vld [vmem:[#allocation10 + $0x20] ss:$8 sps:$4 sm:$0xff]  }
 0x197   : > { %vm756_vm4 = vcmp.gt.f32.partialorder %v666_v14, 0.0  ;;  %v764_v18 = vmul.f32 0.2, %v666_v14  ;;  %1933 = vmatpush3.bf16.msra.mxu0 %v2101_v11  ;;  %v670_v19 = vpop.f32.mrb[7].mxu1  ;;  %v2130_v11 = vld [vmem:[#allocation10] ss:$8 sps:$4 sm:$0xff]  }
 0x198   : > { %vm757_vm5 = vcmp.gt.f32.partialorder %v668_v16, 0.0  ;;  %v765_v22 = vmul.f32 0.2, %v668_v16  ;;  %1934 = vmatprep.subr.bf16.mxu0 %v2103_v13  ;;  %v2135_v13 = vld [vmem:[#allocation10 + $0x14] ss:$8 sps:$4 sm:$0xff]  }
 0x199   : > { %v772_v24 = vsel %vm756_vm4, %v666_v14, %v764_v18  ;;  %v2138_v14 = vld [vmem:[#allocation10 + $0x24] ss:$8 sps:$4 sm:$0xff]   ;;  %v2141_v17 = vld [vmem:[#allocation10 + $0x34] ss:$8 sps:$4 sm:$0xff]   ;;  %v2142_v19 = vld [vmem:[#allocation10 + $0x40] ss:$8 sps:$4 sm:$0xff]  }
 0x19a   : > { %v773_v25 = vsel %vm757_vm5, %v668_v16, %v765_v22  ;;  %v780_v30 = vpack.c.bf16 %v772_v24, %v772_v24  ;;  %v2139_v16 = vld [vmem:[#allocation10 + $0x30] ss:$8 sps:$4 sm:$0xff]   ;;  %v2144_v18 = vld [vmem:[#allocation10 + $0x44] ss:$8 sps:$4 sm:$0xff]   ;;  %v2153_v24 = vld [vmem:[#allocation10 + $0x74] ss:$8 sps:$4 sm:$0xff]  }
 0x19b   : > { %1935 = vmatpush3.bf16.msra.mxu0 %v2105_v20  ;;  %v781_v26 = vpack.c.bf16 %v773_v25, %v773_v25  ;;  %v2147_v20 = vld [vmem:[#allocation10 + $0x54] ss:$8 sps:$4 sm:$0xff]   ;;  %v2150_v22 = vld [vmem:[#allocation10 + $0x64] ss:$8 sps:$4 sm:$0xff]   ;;  %v2151_v25 = vld [vmem:[#allocation10 + $0x70] ss:$8 sps:$4 sm:$0xff]  }
 0x19c   : > { %1936 = vmatprep.subr.bf16.mxu0 %v2106_v23  ;;  %v2148_v23 = vld [vmem:[#allocation10 + $0x60] ss:$8 sps:$4 sm:$0xff]  }
 0x19d   : > { %1377 = vmatprep.mubr.bf16.mxu1 %v781_v26 }
 0x19e   : > { %1378 = vmatmul.mubr.bf16.vlgmr.msra.gmra.mrb[12].mxu1 %v780_v30 }
 0x19f   : > { %1937 = vmatpush3.bf16.msra.mxu0 %v2108_v27  ;;  %1951 = vmatpush3.bf16.msra.mxu1 %v2109_v28 }
 0x1a0   : > { %1938 = vmatprep.subr.bf16.mxu0 %v2110_v31  ;;  %1952 = vmatprep.subr.bf16.mxu1 %v2111_v32  ;;  %v1797_v31 = vld [vmem:[%s2758_s4] ss:$0 sm:$0xff] }
 0x1a3   : > { %1939 = vmatpush3.bf16.msra.mxu0 %v2112_v34  ;;  %1953 = vmatpush3.bf16.msra.mxu1 %v2113_v35 }
 0x1a4   : > { %1940 = vmatprep.subr.bf16.mxu0 %v2114_v37  ;;  %1954 = vmatprep.subr.bf16.mxu1 %v2115_v42  ;;  %v747_v49 = vpop.f32.mrb[8].mxu1 }
 0x1a5   : > { %v749_v50 = vpop.f32.mrb[9].mxu1  ;;  %v748_v5 = vadd.f32 %v747_v49, %v413_v2 }
 0x1a6   : > { %v750_v51 = vadd.f32 %v749_v50, %v417_v43  ;;  %v751_v52 = vpop.f32.mrb[10].mxu1 }
 0x1a7   : > { %1941 = vmatpush3.bf16.msra.mxu0 %v2116_v45  ;;  %1955 = vmatpush3.bf16.msra.mxu1 %v2117_v46  ;;  %v752_v56 = vpop.f32.mrb[11].mxu1  ;;  %v768_v8 = vmul.f32 0.2, %v748_v5  ;;  %vm760_vm8 = vcmp.gt.f32.partialorder %v748_v5, 0.0 }
 0x1a8   : > { %1942 = vmatprep.subr.bf16.mxu0 %v2118_v47  ;;  %1956 = vmatprep.subr.bf16.mxu1 %v2119_v48  ;;  %vm761_vm7 = vcmp.gt.f32.partialorder %v750_v51, 0.0  ;;  %v769_v58 = vmul.f32 0.2, %v750_v51 }
 0x1a9   : > { %v776_v10 = vsel %vm760_vm8, %v748_v5, %v768_v8 }
 0x1aa   : > { %v777_v61 = vsel %vm761_vm7, %v750_v51, %v769_v58  ;;  %v784_v40 = vpack.c.bf16 %v776_v10, %v776_v10  ;;  %v1485_v58 = vld [vmem:[%s2760_s6] sm:$0x3] }
 0x1ab   : > { %1943 = vmatpush3.bf16.msra.mxu0 %v2120_v54  ;;  %1957 = vmatpush3.bf16.msra.mxu1 %v2121_v55  ;;  %v785_v63 = vpack.c.bf16 %v777_v61, %v777_v61  ;;  %v1490_v59 = vrot.slane %v1485_v58, %v388_v39 }
 0x1ac   : > { %1958 = vmatprep.subr.bf16.mxu1 %v2122_v57  ;;  %1577 = vmatprep.subr.bf16.mxu0 %v2132_v12 }
 0x1ad   : > { %1457 = vmatprep.mubr.bf16.mxu1 %v785_v63 }
 0x1ae   : > { %1418 = vmatmul.mubr.bf16.vlgmr.msra.gmra.mrb[8].mxu0 %v782_v60  ;;  %v1494_v60 = vrot.slane %v1485_v58, %v392_v41 }
 0x1af   : > { %1959 = vmatpush3.bf16.msra.mxu1 %v2123_v62  ;;  %1609 = vmatprep.mubr.bf16.mxu0 %v2383_v0  ;;  %v2133_v0 = vld [vmem:[#allocation10 + $0x10] ss:$8 sps:$4 sm:$0xff]  }
 0x1b0   : > { %1960 = vmatprep.subr.bf16.mxu1 %v2124_v1  ;;  %1578 = vmatpush1.bf16.msra.mxu0 %v2130_v11 }
 0x1b1   : > { %1579 = vmatprep.subr.bf16.mxu0 %v2135_v13 }
 0x1b3   : > { %1961 = vmatpush3.bf16.msra.mxu1 %v2125_v3 }
 0x1b4   : > { %1962 = vmatprep.subr.bf16.mxu1 %v2126_v4  ;;  %1580 = vmatpush1.bf16.msra.mxu0 %v2133_v0 }
 0x1b5   : > { %1581 = vmatprep.subr.bf16.mxu0 %v2138_v14 }
 0x1b7   : > { %1963 = vmatpush3.bf16.msra.mxu1 %v2127_v6 }
 0x1b8   : > { %1964 = vmatprep.subr.bf16.mxu1 %v2128_v7  ;;  %1582 = vmatpush1.bf16.msra.mxu0 %v2136_v15 }
 0x1b9   : > { %1583 = vmatprep.subr.bf16.mxu0 %v2141_v17 }
 0x1bb   : > { %1965 = vmatpush3.bf16.msra.mxu1 %v2129_v9 }
 0x1bc   : > { %1584 = vmatpush1.bf16.msra.mxu0 %v2139_v16 }
 0x1bd   : > { %1585 = vmatprep.subr.bf16.mxu0 %v2144_v18 }
 0x1be   : > { %1458 = vmatmul.mubr.bf16.vlgmr.msra.gmra.mrb[16].mxu1 %v784_v40 }
 0x1c0   : > { %1586 = vmatpush1.bf16.msra.mxu0 %v2142_v19 }
 0x1c1   : > { %1587 = vmatprep.subr.bf16.mxu0 %v2147_v20 }
 0x1c4   : > { %1588 = vmatpush1.bf16.msra.mxu0 %v2145_v21 }
 0x1c5   : > { %1589 = vmatprep.subr.bf16.mxu0 %v2150_v22 }
 0x1c8   : > { %1590 = vmatpush1.bf16.msra.mxu0 %v2148_v23 }
 0x1c9   : > { %1591 = vmatprep.subr.bf16.mxu0 %v2153_v24 }
 0x1cc   : > { %1592 = vmatpush1.bf16.msra.mxu0 %v2151_v25 }
 0x261   : > { %v1900_v26 = vpop.f32.mrb[4].mxu0 }
 0x262   : > { %v1901_v27 = vpop.f32.mrb[5].mxu0 }
 0x263   : > { %v1902_v28 = vadd.f32 %v1901_v27, %v1900_v26  ;;  %v1903_v29 = vpop.f32.mrb[6].mxu0 }
 0x264   : > { %v1904_v30 = vpop.f32.mrb[7].mxu0 }
 0x265   : > { %v1340_v34 = vadd.f32 %v1902_v28, %v1797_v31 }
 0x271   : > { %v1922_v32 = vpop.f32.mrb[12].mxu1 }
 0x272   : > { %v1923_v33 = vpop.f32.mrb[13].mxu1 }
 0x273   : > { %v1924_v35 = vadd.f32 %v1923_v33, %v1922_v32  ;;  %v1925_v36 = vpop.f32.mrb[14].mxu1 }
 0x274   : > { %v1926_v37 = vpop.f32.mrb[15].mxu1 }
 0x275   : > { %v1380_v42 = vadd.f32 %v1924_v35, %v1340_v34 }
 0x281   : > { %v1944_v43 = vpop.f32.mrb[8].mxu0 }
 0x282   : > { %v1945_v44 = vpop.f32.mrb[9].mxu0 }
 0x283   : > { %v1946_v45 = vadd.f32 %v1945_v44, %v1944_v43  ;;  %v1947_v46 = vpop.f32.mrb[10].mxu0 }
 0x284   : > { %v1948_v47 = vpop.f32.mrb[11].mxu0 }
 0x285   : > { %v1420_v48 = vadd.f32 %v1946_v45, %v1380_v42 }
 0x291   : > { %v1966_v49 = vpop.f32.mrb[16].mxu1 }
 0x292   : > { %v1967_v50 = vpop.f32.mrb[17].mxu1 }
 0x293   : > { %v1968_v51 = vadd.f32 %v1967_v50, %v1966_v49  ;;  %v1969_v52 = vpop.f32.mrb[18].mxu1 }
 0x294   : > { %v1970_v53 = vpop.f32.mrb[19].mxu1 }
 0x295   : > { %v1460_v54 = vadd.f32 %v1968_v51, %v1420_v48 }
 0x297   : > { %vm1465_vm9 = vcmp.gt.f32.partialorder %v1460_v54, 0.0  ;;  %v1466_v55 = vmul.f32 0.2, %v1460_v54 }
 0x299   : > { %v1467_v56 = vsel %vm1465_vm9, %v1460_v54, %v1466_v55 }
 0x29a   : > { %v1468_v57 = vpack.c.bf16 %v1467_v56, %v1467_v56 }
 0x29c   : > { %1610 = vmatmul.mubr.bf16.vlgmr.msra.gmra.mrb[12].mxu0 %v1468_v57 }
 0x36f   : > { %v1611_v61 = vpop.f32.mrb[12].mxu0 }
 0x370   : > { %v1612_v62 = vadd.f32 %v1611_v61, %v1490_v59  ;;  %v1613_v63 = vpop.f32.mrb[13].mxu0 }
 0x371   : > { %v1614_v1 = vadd.f32 %v1613_v63, %v1494_v60  ;;  %v1615_v2 = vpop.f32.mrb[14].mxu0 }
 0x372   : > { %v1618_v3 = vmax.f32 %v1612_v62, 0.0  ;;  %v1616_v4 = vpop.f32.mrb[15].mxu0 }
 0x373   : > { %v1619_v5 = vmax.f32 %v1614_v1, 0.0 }
 0x374   : > { %1620 = vst [vmem:[%s349_s12] sm:$0xff] %v1618_v3 }
 0x375   : > { %1621 = vst [vmem:[%s349_s12 + $0x8] sm:$0xff] %v1619_v5 }
 0x376   : > { %2309 = shalt.err (!%p2306_p12)
}
 0x377   : > { %s2310_s28 = scalar_lea.hbm %s2710_s13, 256  ;;  %s2314_s10 = scalar_lea.hbm %s2761_s7, 512 }
 0x378   : > { %p2311_p13 = scmp.ne.s32.totalorder %s2710_s13, %s2310_s28  ;;  %p2315_p9 = scmp.lt.u32.totalorder %s2710_s13, %s2761_s7 }
 0x379   : > { %p2316_p4 = scmp.lt.u32.totalorder %s2314_s10, %s2310_s28  ;;  %p2318_p6 = scmp.lt.u32.totalorder %s2310_s28, %s2710_s13 }
 0x37a   : > { %p2312_p1 = pnand %p2311_p13, %p2779_p0 }
 0x37b   : > { %p2317_p8 = por %p2316_p4, %p2315_p9 }
 0x37c   : > { %p2313_p7 = pneg %p2312_p1 }
 0x37d   : > { %p2319_p2 = por %p2318_p6, %p2317_p8 }
 0x37f   : > { %p2320_p5 = pnand %p2319_p2, %p2313_p7 }
 0x381   : > { %2323 = shalt.err (!%p2320_p5)
}
 0x382   : > { %1990 = dma.vmem_to_hbm [thread:$0]  (%p2779_p0), %s2712_s20, 256, %s2710_s13, %s1623_s30  }
 0x383 PF: > { %s1649_s16 = sand.u32 1, %s2358_s24   ;;  %p2780_p10 = scmp.ne.s32.totalorder %s2772_s15, 0 }
 0x384   : > { %p2781_p11 = scmp.ge.s32.totalorder %s2370_s27, 2  ;;  %s1650_s17 = scalar_lea.sflag [#allocation4], %s1649_s16 }
 0x386   : > { %p2010_p3 = pnand %p2781_p11, %p2780_p10 }
 0x388   : > { %2353 = dma.done.wait (!%p2010_p3), %s1650_s17, 256  }
 0x389   : > { %2355 = vsyncadd (!%p2010_p3), %s1650_s17, 4294967040  ;;  %p22_p12 = scmp.ge.s32.totalorder %s2561_s29, 4   ;;  %s2782_s24 = smov %s2362_s25 }
 0x38a   : > { %s2783_s25 = smov %s2366_s26  ;;  %s2784_s26 = smov %s2572_s9 }
 0x38b   : > { %s2785_s27 = smov %s2561_s29  ;;  %24 = sbr.rel (!%p22_p12) target bundleno = 7 (0x7), region = 109 }
 0x392   :  { %1655 = vsyncpa [#allocation3], 1 }
 0x393   :  { %1657 = vsyncpa [#allocation3 + $0x1], 1 }
 0x394   :  { %1658 = vsyncpa [#allocation6], 1 }
 0x395   :  { %1659 = vsyncpa [#allocation9], 1 }
 0x396   :  { %1660 = vsyncpa [#allocation4], 1 }
 0x397   :  { %1662 = vsyncpa [#allocation4 + $0x1], 1 }

</bundles_post_ra>
